<compile_context>
chip_gen: v5e
topology: v5e:2x2
jax: 0.10.0
libtpu: 0.0.40
codegen_flags: <defaults>
</compile_context>

<pallas_src>
import math

import jax
import jax.numpy as jnp
from jax import lax
from jax.experimental import pallas as pl
from jax.experimental.pallas import tpu as pltpu

D_IN = 512      # attention_net input features
D_HID = 256     # hidden width of attn1 / attn2
D2 = 2 * D_HID  # fused attn1+attn2 output rows
LANE = 128      # TPU vreg lane width


# ----------------------------------------------------------------------------
# Fused attention_net kernel
#   x_ref  : (tn, 512)  f32   natural-layout feature block (instances on rows)
#   wc_ref : (512, 512) bf16  [attn1_w ; attn2_w]  (PyTorch (out, in) layout)
#   bc_ref : (512, 1)   f32   [attn1_b ; attn2_b]
#   wf_ref : (256, 1)   f32   fc weight as a column
#   bf_ref : (1, 1)     f32   fc bias (SMEM scalar)
#   a_ref  : (1, tn)    f32   lane-dense attention scores
# ----------------------------------------------------------------------------
def _attention_net_kernel(x_ref, wc_ref, bc_ref, wf_ref, bf_ref, a_ref):
    xb = x_ref[...].astype(jnp.bfloat16)              # bf16 only for the MXU
    # One fused MXU matmul for attn1 + attn2, contracting on x's feature axis
    # (transposed-RHS feed) so the result keeps instances on the lane axis.
    h = lax.dot_general(
        wc_ref[...], xb,
        dimension_numbers=(((1,), (1,)), ((), ())),
        preferred_element_type=jnp.float32)            # (512, tn) f32 accum
    h = h + bc_ref[...]                                 # f32 bias add
    t = jnp.tanh(h[:D_HID, :])                          # attn1 branch (EUP)
    s = 0.5 * jnp.tanh(0.5 * h[D_HID:, :]) + 0.5        # sigmoid via one tanh
    g = t * s                                            # gating (VPU, f32)
    # Final 1x256 projection off the MXU: VPU multiply + sublane reduce (XLU).
    a = jnp.sum(g * wf_ref[...], axis=0, keepdims=True) + bf_ref[0, 0]
    a_ref[...] = jnp.maximum(a, 0.0)                     # ReLU


def pack_attention_net_params(params):
    """One-time packing of torch-layout params into kernel-ready operands."""
    wc = jnp.concatenate([params["attn1_w"], params["attn2_w"]], axis=0)
    bc = jnp.concatenate([params["attn1_b"], params["attn2_b"]], axis=0)
    return {
        "wc": wc.astype(jnp.bfloat16),                  # (512, 512) bf16
        "bc": bc.reshape(D2, 1).astype(jnp.float32),    # (512, 1)   f32
        "wf": params["fc_w"].reshape(D_HID, 1).astype(jnp.float32),
        "bf": params["fc_b"].reshape(1, 1).astype(jnp.float32),
    }


def attention_net_forward(packed, features, *, max_tile=2048):
    """features: (N, 512) float32 -> A: (N, 1) float32 (matches the torch module)."""
    N, D = features.shape
    assert D == D_IN, f"attention_net expects {D_IN}-d features, got {D}"

    # Tile selection: lane-multiple, capped at max_tile, and split so the grid
    # has >= 2 steps when the bag is big enough (both v7x TensorCores work).
    n_lane = pl.cdiv(N, LANE) * LANE
    half = ((n_lane // 2) // LANE) * LANE
    tn = min(max_tile, max(LANE, half))
    n_pad = pl.cdiv(n_lane, tn) * tn
    grid_n = n_pad // tn

    x = features.astype(jnp.float32)
    if n_pad != N:
        # TODO(synk): zero row-pad is a single copy pass over the features; it
        # is skipped entirely whenever N is already a multiple of tn.
        x = jnp.pad(x, ((0, n_pad - N), (0, 0)))

    # Per-kernel VMEM budget from the real tile footprint (weights counted
    # double-buffered even though their index_map is constant), capped at
    # 48 MiB so it stays inside v7x's 64 MiB VMEM.
    vmem_bytes = (
        2 * tn * D_IN * 4          # f32 x tile, double buffered
        + tn * D_IN * 2            # in-kernel bf16 copy of the x tile
        + 2 * D2 * D_IN * 2        # fused weight (bf16), double buffered
        + 2 * D2 * LANE * 4        # fused bias column (lane-padded), x2
        + 2 * D_HID * LANE * 4     # wf column (lane-padded), x2
        + 2 * 2 * tn * 4           # out tile, double buffered
        + 6 * D_HID * tn * 4       # h / tanh / sigmoid / gating intermediates
    )
    vmem_bytes = min(int(vmem_bytes) + (8 << 20), 48 << 20)

    out = pl.pallas_call(
        _attention_net_kernel,
        out_shape=jax.ShapeDtypeStruct((1, n_pad), jnp.float32),
        grid=(grid_n,),
        in_specs=[
            pl.BlockSpec((tn, D_IN), lambda i: (i, 0)),        # x block
            pl.BlockSpec((D2, D_IN), lambda i: (0, 0)),        # fused weights
            pl.BlockSpec((D2, 1), lambda i: (0, 0)),           # fused biases
            pl.BlockSpec((D_HID, 1), lambda i: (0, 0)),        # fc weight col
            pl.BlockSpec(memory_space=pltpu.MemorySpace.SMEM), # fc bias scalar
        ],
        out_specs=pl.BlockSpec((1, tn), lambda i: (0, i)),
        compiler_params=pltpu.CompilerParams(
            dimension_semantics=("parallel",),  # v7x: both TCs share the N tiles
            vmem_limit_bytes=vmem_bytes),
    )(x, packed["wc"], packed["bc"], packed["wf"], packed["bf"])

    return out[0, :N].reshape(N, 1)


# ----------------------------------------------------------------------------
# Parameters (deterministic synthetic init, PyTorch nn.Linear-style uniform)
# ----------------------------------------------------------------------------
def init_params(key):
    # TODO(synk): weights are deterministic synthetic (PyTorch-default uniform
    # fan-in init), not a trained checkpoint.
    keys = jax.random.split(key, 6)

    def linear(kw, kb, fan_out, fan_in):
        bound = 1.0 / math.sqrt(fan_in)
        w = jax.random.uniform(kw, (fan_out, fan_in), jnp.float32, -bound, bound)
        b = jax.random.uniform(kb, (fan_out,), jnp.float32, -bound, bound)
        return w, b

    p = {}
    p["attn1_w"], p["attn1_b"] = linear(keys[0], keys[1], D_HID, D_IN)
    p["attn2_w"], p["attn2_b"] = linear(keys[2], keys[3], D_HID, D_IN)
    p["fc_w"], p["fc_b"] = linear(keys[4], keys[5], 1, D_HID)
    return p


# Pure-JAX f32 reference (correctness check only; Dropout = identity at inference)
def attention_net_reference(params, features):
    a1 = jnp.tanh(features @ params["attn1_w"].T + params["attn1_b"])
    a2 = jax.nn.sigmoid(features @ params["attn2_w"].T + params["attn2_b"])
    g = a1 * a2
    return jnp.maximum(g @ params["fc_w"].T + params["fc_b"], 0.0)


if __name__ == "__main__":
    key = jax.random.PRNGKey(0)
    kp, kx = jax.random.split(key)
    params = init_params(kp)
    packed = pack_attention_net_params(params)

    N = 8                                     # MIL bag of 8 instances, 512-d each
    features = jax.random.normal(kx, (N, D_IN), jnp.float32)

    A = attention_net_forward(packed, features)
    jax.block_until_ready(A)

    assert A.shape == (N, 1)
    A_ref = attention_net_reference(params, features)
    # bf16 MXU operands (f32 accumulation) over K=512 -> relaxed tolerance vs
    # the pure-f32 reference.
    max_err = float(jnp.max(jnp.abs(A - A_ref)))
    assert max_err < 5e-2, f"mismatch vs reference: {max_err}"
    print("KERNEL_OK")
</pallas_src>

<mosaic_0001>
module attributes {stable_mosaic.version = 11 : i64} {
  func.func @_attention_net_kernel(%arg0: i32, %arg1: memref<128x512xf32, #tpu.memory_space<vmem>>, %arg2: memref<512x512xbf16, #tpu.memory_space<vmem>>, %arg3: memref<512x1xf32, #tpu.memory_space<vmem>>, %arg4: memref<256x1xf32, #tpu.memory_space<vmem>>, %arg5: memref<1x1xf32, #tpu.memory_space<smem>>, %arg6: memref<1x128xf32, #tpu.memory_space<vmem>>) attributes {dimension_semantics = [#tpu.dimension_semantics<parallel>], iteration_bounds = array<i64: 1>, scalar_prefetch = 0 : i64, scratch_operands = 0 : i64, tpu.core_type = #tpu.core_type<tc>, window_params = [{transform_indices = @transform_0, window_bounds = array<i64: 128, 512>}, {pipeline_mode = #tpu.pipeline_mode<synchronous>, transform_indices = @transform_1, window_bounds = array<i64: 512, 512>}, {pipeline_mode = #tpu.pipeline_mode<synchronous>, transform_indices = @transform_2, window_bounds = array<i64: 512, 1>}, {pipeline_mode = #tpu.pipeline_mode<synchronous>, transform_indices = @transform_3, window_bounds = array<i64: 256, 1>}, {transform_indices = @transform_4, window_bounds = array<i64: 1, 1>}, {transform_indices = @transform_5, window_bounds = array<i64: 1, 128>}]} {
    %c0 = arith.constant 0 : index
    %c0_0 = arith.constant 0 : index
    %0 = vector.load %arg1[%c0, %c0_0] : memref<128x512xf32, #tpu.memory_space<vmem>>, vector<128x512xf32>
    %1 = arith.truncf %0 : vector<128x512xf32> to vector<128x512xbf16>
    %c0_1 = arith.constant 0 : index
    %c0_2 = arith.constant 0 : index
    %2 = vector.load %arg2[%c0_1, %c0_2] : memref<512x512xbf16, #tpu.memory_space<vmem>>, vector<512x512xbf16>
    %cst = arith.constant dense<0.000000e+00> : vector<512x128xf32>
    %3 = tpu.matmul %2, %1, %cst {dimension_numbers = #tpu.dot_dimension_numbers<[1], [1], [0], [0], [0, 0, 1, 0], [], []>} : vector<512x512xbf16>, vector<128x512xbf16>, vector<512x128xf32> -> vector<512x128xf32>
    %c0_3 = arith.constant 0 : index
    %c0_4 = arith.constant 0 : index
    %4 = vector.load %arg3[%c0_3, %c0_4] : memref<512x1xf32, #tpu.memory_space<vmem>>, vector<512x1xf32>
    %5 = vector.broadcast %4 : vector<512x1xf32> to vector<512x128xf32>
    %6 = arith.addf %3, %5 : vector<512x128xf32>
    %7 = vector.extract_strided_slice %6 {offsets = [0, 0], sizes = [256, 128], strides = [1, 1]} : vector<512x128xf32> to vector<256x128xf32>
    %8 = math.tanh %7 : vector<256x128xf32>
    %9 = vector.extract_strided_slice %6 {offsets = [256, 0], sizes = [256, 128], strides = [1, 1]} : vector<512x128xf32> to vector<256x128xf32>
    %cst_5 = arith.constant 5.000000e-01 : f32
    %10 = vector.broadcast %cst_5 : f32 to vector<256x128xf32>
    %11 = arith.mulf %10, %9 : vector<256x128xf32>
    %12 = math.tanh %11 : vector<256x128xf32>
    %cst_6 = arith.constant 5.000000e-01 : f32
    %13 = vector.broadcast %cst_6 : f32 to vector<256x128xf32>
    %14 = arith.mulf %13, %12 : vector<256x128xf32>
    %cst_7 = arith.constant 5.000000e-01 : f32
    %15 = vector.broadcast %cst_7 : f32 to vector<256x128xf32>
    %16 = arith.addf %14, %15 : vector<256x128xf32>
    %17 = arith.mulf %8, %16 : vector<256x128xf32>
    %c0_8 = arith.constant 0 : index
    %c0_9 = arith.constant 0 : index
    %18 = vector.load %arg4[%c0_8, %c0_9] : memref<256x1xf32, #tpu.memory_space<vmem>>, vector<256x1xf32>
    %19 = vector.broadcast %18 : vector<256x1xf32> to vector<256x128xf32>
    %20 = arith.mulf %17, %19 : vector<256x128xf32>
    %cst_10 = arith.constant dense<0.000000e+00> : vector<128xf32>
    %21 = vector.multi_reduction <add>, %20, %cst_10 [0] : vector<256x128xf32> to vector<128xf32>
    %22 = vector.shape_cast %21 : vector<128xf32> to vector<1x128xf32>
    %c0_11 = arith.constant 0 : index
    %c0_12 = arith.constant 0 : index
    %23 = memref.load %arg5[%c0_11, %c0_12] : memref<1x1xf32, #tpu.memory_space<smem>>
    %24 = vector.broadcast %23 : f32 to vector<1x128xf32>
    %25 = arith.addf %22, %24 : vector<1x128xf32>
    %cst_13 = arith.constant 0.000000e+00 : f32
    %26 = vector.broadcast %cst_13 : f32 to vector<1x128xf32>
    %27 = arith.maximumf %25, %26 : vector<1x128xf32>
    %c0_14 = arith.constant 0 : index
    %c0_15 = arith.constant 0 : index
    %28 = vector.load %arg6[%c0_14, %c0_15] : memref<1x128xf32, #tpu.memory_space<vmem>>, vector<1x128xf32>
    tpu.vector_store %arg6[%c0_14, %c0_15], %27 {strides = array<i32>} : memref<1x128xf32, #tpu.memory_space<vmem>>, vector<1x128xf32>,
    return
  }
  func.func @transform_0(%arg0: i32) -> (i32, i32) {
    %c0_i32 = arith.constant 0 : i32
    %c0_i32_0 = arith.constant 0 : i32
    return %arg0, %c0_i32 : i32, i32
  }
  func.func @transform_1(%arg0: i32) -> (i32, i32) {
    %c0_i32 = arith.constant 0 : i32
    %c0_i32_0 = arith.constant 0 : i32
    %c0_i32_1 = arith.constant 0 : i32
    return %c0_i32, %c0_i32_0 : i32, i32
  }
  func.func @transform_2(%arg0: i32) -> (i32, i32) {
    %c0_i32 = arith.constant 0 : i32
    %c0_i32_0 = arith.constant 0 : i32
    %c0_i32_1 = arith.constant 0 : i32
    return %c0_i32, %c0_i32_0 : i32, i32
  }
  func.func @transform_3(%arg0: i32) -> (i32, i32) {
    %c0_i32 = arith.constant 0 : i32
    %c0_i32_0 = arith.constant 0 : i32
    %c0_i32_1 = arith.constant 0 : i32
    return %c0_i32, %c0_i32_0 : i32, i32
  }
  func.func @transform_4(%arg0: i32) -> (i32, i32) {
    %c0_i32 = arith.constant 0 : i32
    %c0_i32_0 = arith.constant 0 : i32
    %c0_i32_1 = arith.constant 0 : i32
    return %c0_i32, %c0_i32_0 : i32, i32
  }
  func.func @transform_5(%arg0: i32) -> (i32, i32) {
    %c0_i32 = arith.constant 0 : i32
    %c0_i32_0 = arith.constant 0 : i32
    return %c0_i32, %arg0 : i32, i32
  }
}

</mosaic_0001>

<bundles_post_ra>
// kernel: tpu_custom_call.1
= control target key start
LH: loop header
LB: loop body
LE: loop exit
PB: predicated region body
PF: predicated region fallthrough
CT: control target
= control target key end

     0   :  { %11 = vsyncpa [#allocation4], 0  ;;  %s4011_s0 = inlined_call_operand.vmem [shape: f32[128,512], index: 0, kind: input, shape index: {}]   ;;  %s4012_s1 = inlined_call_operand.hbm [shape: bf16[512,512], index: 1, kind: input, shape index: {}]   ;;  %s4013_s2 = inlined_call_operand.vmem [shape: f32[512,1], index: 2, kind: input, shape index: {}]   ;;  %s4014_s3 = inlined_call_operand.vmem [shape: f32[256,1], index: 3, kind: input, shape index: {}]   ;;  %s4015_s4 = inlined_call_operand.<no memory space> [shape: f32[1,1], index: 4, kind: input, shape index: {}]   ;;  %s4016_s5 = inlined_call_operand.hbm [shape: f32[1,128], index: 5, kind: output, shape index: {}]  }
   0x1   :  { %12 = vsyncpa [#allocation5], 0  ;;  %s19_s20 = sshll.u32 %s4012_s1, 4  ;;  %s3265_s21 = smov [#allocation3]   ;;  %s20_s20 = int_to_ptr.hbm [resolvable:$true] %s19_s20 }
   0x2   :  { %s21_s22 = sshll.u32 %s3265_s21, 4  ;;  %s3266_s23 = smov 256   ;;  %s22_s22 = int_to_ptr.vmem [resolvable:$true] %s21_s22 }
   0x3   :  { %s3267_s24 = smov 16  }
   0x4   :  { %27 = dma.hbm_to_vmem [thread:$0]  %s20_s20, 16384, %s22_s22, [#allocation4], %s3266_s23, %s3266_s23, %s3267_s24  }
   0x5   :  { %3261 = dma.done.wait [#allocation4], 16384  }
   0x6   :  { %3262 = vsyncadd [#allocation4], 4294950912  ;;  %v94_v0 = vld [vmem:[%s4011_s0 + $0x1c0] sm:$0xff]  ;;  %v95_v2 = vld [vmem:[%s4011_s0 + $0x1c8] sm:$0xff]  ;;  %s3269_s25 = smov [#allocation6]  }
   0x7   :  { %v98_v1 = vld [vmem:[%s4011_s0 + $0x1e0] sm:$0xff]  ;;  %v99_v4 = vld [vmem:[%s4011_s0 + $0x1e8] sm:$0xff]  ;;  %v96_v5 = vld [vmem:[%s4011_s0 + $0x1d0] sm:$0xff]  ;;  %s2425_s26 = sshll.u32 %s3269_s25, 4  ;;  %s2426_s26 = int_to_ptr.vmem [resolvable:$true] %s2425_s26 }
   0x8   :  { %v130_v3 = vpack.c.bf16 %v98_v1, %v94_v0  ;;  %v100_v6 = vld [vmem:[%s4011_s0 + $0x1f0] sm:$0xff]  ;;  %v131_v7 = vpack.c.bf16 %v99_v4, %v95_v2  ;;  %v97_v9 = vld [vmem:[%s4011_s0 + $0x1d8] sm:$0xff]  ;;  %v86_v12 = vld [vmem:[%s4011_s0 + $0x180] sm:$0xff] }
   0x9   :  { %v132_v8 = vpack.c.bf16 %v100_v6, %v96_v5  ;;  %v101_v10 = vld [vmem:[%s4011_s0 + $0x1f8] sm:$0xff]  ;;  %v90_v13 = vld [vmem:[%s4011_s0 + $0x1a0] sm:$0xff]  ;;  %v87_v14 = vld [vmem:[%s4011_s0 + $0x188] sm:$0xff] }
   0xa   :  { %1286 = vmatpush.bf16.xpose.msra.mxu0 %v130_v3  ;;  %v133_v11 = vpack.c.bf16 %v101_v10, %v97_v9  ;;  %1455 = vmatpush.bf16.xpose.msra.mxu1 %v131_v7  ;;  %v91_v15 = vld [vmem:[%s4011_s0 + $0x1a8] sm:$0xff]  ;;  %v88_v16 = vld [vmem:[%s4011_s0 + $0x190] sm:$0xff]  ;;  %v89_v18 = vld [vmem:[%s4011_s0 + $0x198] sm:$0xff]  ;;  %v126_v20 = vpack.c.bf16 %v90_v13, %v86_v12  ;;  %v3268_v3 = vmov 0  }
   0xb   :  { %1624 = vmatpush.bf16.xpose.msra.mxu2 %v132_v8  ;;  %v92_v17 = vld [vmem:[%s4011_s0 + $0x1b0] sm:$0xff]  ;;  %v93_v19 = vld [vmem:[%s4011_s0 + $0x1b8] sm:$0xff]  ;;  %v127_v21 = vpack.c.bf16 %v91_v15, %v87_v14  ;;  %v78_v24 = vld [vmem:[%s4011_s0 + $0x140] sm:$0xff]  ;;  %3082 = vset.pattern.permute.xlu0 %v3268_v3 }
   0xc   :  { %1793 = vmatpush.bf16.xpose.msra.mxu3 %v133_v11  ;;  %v128_v22 = vpack.c.bf16 %v92_v17, %v88_v16  ;;  %v129_v23 = vpack.c.bf16 %v93_v19, %v89_v18  ;;  %v82_v25 = vld [vmem:[%s4011_s0 + $0x160] sm:$0xff]  ;;  %v79_v26 = vld [vmem:[%s4011_s0 + $0x148] sm:$0xff]  ;;  %v80_v28 = vld [vmem:[%s4011_s0 + $0x150] sm:$0xff]  ;;  %3083 = vset.pattern.permute.xlu1 %v3268_v3 }
   0xd   :  { %v83_v27 = vld [vmem:[%s4011_s0 + $0x168] sm:$0xff]  ;;  %v84_v29 = vld [vmem:[%s4011_s0 + $0x170] sm:$0xff]  ;;  %v81_v30 = vld [vmem:[%s4011_s0 + $0x158] sm:$0xff]  ;;  %v122_v32 = vpack.c.bf16 %v82_v25, %v78_v24  ;;  %3084 = vset.pattern.permute.xlu2 %v3268_v3 }
   0xe   :  { %v85_v31 = vld [vmem:[%s4011_s0 + $0x178] sm:$0xff]  ;;  %v123_v33 = vpack.c.bf16 %v83_v27, %v79_v26  ;;  %v124_v34 = vpack.c.bf16 %v84_v29, %v80_v28  ;;  %v70_v36 = vld [vmem:[%s4011_s0 + $0x100] sm:$0xff]  ;;  %v71_v38 = vld [vmem:[%s4011_s0 + $0x108] sm:$0xff] }
   0xf   :  { %v125_v35 = vpack.c.bf16 %v85_v31, %v81_v30  ;;  %v74_v37 = vld [vmem:[%s4011_s0 + $0x120] sm:$0xff]  ;;  %v75_v39 = vld [vmem:[%s4011_s0 + $0x128] sm:$0xff]  ;;  %v72_v40 = vld [vmem:[%s4011_s0 + $0x110] sm:$0xff] }
  0x10   :  { %v76_v41 = vld [vmem:[%s4011_s0 + $0x130] sm:$0xff]  ;;  %v73_v42 = vld [vmem:[%s4011_s0 + $0x118] sm:$0xff]  ;;  %v118_v44 = vpack.c.bf16 %v74_v37, %v70_v36  ;;  %v119_v45 = vpack.c.bf16 %v75_v39, %v71_v38  ;;  %v62_v48 = vld [vmem:[%s4011_s0 + $0xc0] sm:$0xff] }
  0x11   :  { %v77_v43 = vld [vmem:[%s4011_s0 + $0x138] sm:$0xff]  ;;  %v120_v46 = vpack.c.bf16 %v76_v41, %v72_v40  ;;  %v66_v49 = vld [vmem:[%s4011_s0 + $0xe0] sm:$0xff]  ;;  %v63_v50 = vld [vmem:[%s4011_s0 + $0xc8] sm:$0xff] }
  0x12   :  { %1287 = vmatpush.bf16.xpose.msra.mxu0 %v126_v20  ;;  %1456 = vmatpush.bf16.xpose.msra.mxu1 %v127_v21  ;;  %v121_v47 = vpack.c.bf16 %v77_v43, %v73_v42  ;;  %v67_v51 = vld [vmem:[%s4011_s0 + $0xe8] sm:$0xff]  ;;  %v64_v52 = vld [vmem:[%s4011_s0 + $0xd0] sm:$0xff]  ;;  %v65_v54 = vld [vmem:[%s4011_s0 + $0xd8] sm:$0xff]  ;;  %v114_v56 = vpack.c.bf16 %v66_v49, %v62_v48 }
  0x13   :  { %1625 = vmatpush.bf16.xpose.msra.mxu2 %v128_v22  ;;  %v68_v53 = vld [vmem:[%s4011_s0 + $0xf0] sm:$0xff]  ;;  %v69_v55 = vld [vmem:[%s4011_s0 + $0xf8] sm:$0xff]  ;;  %v115_v57 = vpack.c.bf16 %v67_v51, %v63_v50  ;;  %v54_v60 = vld [vmem:[%s4011_s0 + $0x80] sm:$0xff] }
  0x14   :  { %1794 = vmatpush.bf16.xpose.msra.mxu3 %v129_v23  ;;  %v116_v58 = vpack.c.bf16 %v68_v53, %v64_v52  ;;  %v117_v59 = vpack.c.bf16 %v69_v55, %v65_v54  ;;  %v58_v61 = vld [vmem:[%s4011_s0 + $0xa0] sm:$0xff]  ;;  %v55_v62 = vld [vmem:[%s4011_s0 + $0x88] sm:$0xff]  ;;  %v56_v1 = vld [vmem:[%s4011_s0 + $0x90] sm:$0xff] }
  0x15   :  { %v262_v63 = vld [vmem:[%s4013_s2] sm:$0xff]  ;;  %v59_v0 = vld [vmem:[%s4011_s0 + $0xa8] sm:$0xff]  ;;  %v60_v2 = vld [vmem:[%s4011_s0 + $0xb0] sm:$0xff]  ;;  %v110_v6 = vpack.c.bf16 %v58_v61, %v54_v60 }
  0x16   :  { %v57_v4 = vld [vmem:[%s4011_s0 + $0x98] sm:$0xff]  ;;  %328 = vperm.xlu0 %3082, %v262_v63   ;;  %v111_v7 = vpack.c.bf16 %v59_v0, %v55_v62  ;;  %v112_v8 = vpack.c.bf16 %v60_v2, %v56_v1  ;;  %v46_v10 = vld [vmem:[%s4011_s0 + $0x40] sm:$0xff]  ;;  %v47_v12 = vld [vmem:[%s4011_s0 + $0x48] sm:$0xff] }
  0x17   :  { %v61_v5 = vld [vmem:[%s4011_s0 + $0xb8] sm:$0xff]  ;;  %v50_v11 = vld [vmem:[%s4011_s0 + $0x60] sm:$0xff]  ;;  %v51_v13 = vld [vmem:[%s4011_s0 + $0x68] sm:$0xff] }
  0x18   :  { %v113_v9 = vpack.c.bf16 %v61_v5, %v57_v4  ;;  %v48_v14 = vld [vmem:[%s4011_s0 + $0x50] sm:$0xff]  ;;  %v49_v16 = vld [vmem:[%s4011_s0 + $0x58] sm:$0xff]  ;;  %v106_v18 = vpack.c.bf16 %v50_v11, %v46_v10  ;;  %v107_v19 = vpack.c.bf16 %v51_v13, %v47_v12  ;;  %v38_v22 = vld [vmem:[%s4011_s0] sm:$0xff] }
  0x19   :  { %v52_v15 = vld [vmem:[%s4011_s0 + $0x70] sm:$0xff]  ;;  %v53_v17 = vld [vmem:[%s4011_s0 + $0x78] sm:$0xff]  ;;  %v42_v23 = vld [vmem:[%s4011_s0 + $0x20] sm:$0xff] }
  0x1a   :  { %1288 = vmatpush.bf16.xpose.msra.mxu0 %v122_v32  ;;  %1457 = vmatpush.bf16.xpose.msra.mxu1 %v123_v33  ;;  %v108_v20 = vpack.c.bf16 %v52_v15, %v48_v14  ;;  %v109_v21 = vpack.c.bf16 %v53_v17, %v49_v16  ;;  %v39_v24 = vld [vmem:[%s4011_s0 + $0x8] sm:$0xff]  ;;  %v264_v26 = vld [vmem:[%s4013_s2 + $0x10] sm:$0xff]  ;;  %v41_v30 = vld [vmem:[%s4011_s0 + $0x18] sm:$0xff]  ;;  %v102_v32 = vpack.c.bf16 %v42_v23, %v38_v22 }
  0x1b   :  { %1626 = vmatpush.bf16.xpose.msra.mxu2 %v124_v34  ;;  %v263_v25 = vld [vmem:[%s4013_s2 + $0x8] sm:$0xff]  ;;  %v40_v28 = vld [vmem:[%s4011_s0 + $0x10] sm:$0xff]  ;;  %v45_v31 = vld [vmem:[%s4011_s0 + $0x38] sm:$0xff]  ;;  %338 = vperm.xlu1 %3083, %v264_v26  }
  0x1c   :  { %1795 = vmatpush.bf16.xpose.msra.mxu3 %v125_v35  ;;  %v43_v27 = vld [vmem:[%s4011_s0 + $0x28] sm:$0xff]  ;;  %v44_v29 = vld [vmem:[%s4011_s0 + $0x30] sm:$0xff]  ;;  %v105_v35 = vpack.c.bf16 %v45_v31, %v41_v30  ;;  %v2439_v36 = vld [vmem:[#allocation3] sm:$0xf]  ;;  %s2427_s0 = sshll.u32 %s4016_s5, 4  ;;  %s2428_s0 = int_to_ptr.hbm [resolvable:$true] %s2427_s0 }
  0x1d   :  { %v103_v33 = vpack.c.bf16 %v43_v27, %v39_v24  ;;  %v104_v34 = vpack.c.bf16 %v44_v29, %v40_v28  ;;  %v2951_v37 = vld [vmem:[#allocation3 + $0xc] sm:$0xf0]  ;;  %v2949_v38 = vld [vmem:[#allocation3 + $0x4] sm:$0xf]  ;;  %v2441_v39 = vld [vmem:[#allocation3 + $0x10] sm:$0xf0] }
  0x1e   :  { %333 = vperm.xlu0 %3082, %v263_v25   ;;  %v2447_v40 = vld [vmem:[#allocation3 + $0x8] sm:$0xf]  ;;  %v2952_v41 = vld [vmem:[#allocation3 + $0x14] sm:$0xf0]  ;;  %v2950_v42 = vld [vmem:[#allocation3 + $0xc] sm:$0xf] }
  0x1f   :  { %v2449_v43 = vld [vmem:[#allocation3 + $0x18] sm:$0xf0]  ;;  %v2455_v49 = vld [vmem:[#allocation3 + $0x20] sm:$0xf]  ;;  %v2955_v50 = vld [vmem:[#allocation3 + $0x2c] sm:$0xf0] }
  0x20   :  { %v265_v48 = vld [vmem:[%s4013_s2 + $0x18] sm:$0xff]  ;;  %v2953_v51 = vld [vmem:[#allocation3 + $0x24] sm:$0xf]  ;;  %v2457_v52 = vld [vmem:[#allocation3 + $0x30] sm:$0xf0] }
  0x21   :  { %v2463_v53 = vld [vmem:[#allocation3 + $0x28] sm:$0xf]  ;;  %v2956_v54 = vld [vmem:[#allocation3 + $0x34] sm:$0xf0]  ;;  %v2954_v55 = vld [vmem:[#allocation3 + $0x2c] sm:$0xf] }
  0x22   :  { %1289 = vmatpush.bf16.xpose.msra.mxu0 %v118_v44  ;;  %1458 = vmatpush.bf16.xpose.msra.mxu1 %v119_v45  ;;  %v2440_v44 = vor.u32 %v2951_v37, %v2439_v36  ;;  %v2444_v45 = vor.u32 %v2949_v38, %v2441_v39  ;;  %v268_v61 = vld [vmem:[%s4013_s2 + $0x30] sm:$0xff]  ;;  %v269_v62 = vld [vmem:[%s4013_s2 + $0x38] sm:$0xff]  ;;  %v271_v63 = vld [vmem:[%s4013_s2 + $0x48] sm:$0xff] }
  0x23   :  { %1627 = vmatpush.bf16.xpose.msra.mxu2 %v120_v46  ;;  %v2448_v46 = vor.u32 %v2952_v41, %v2447_v40  ;;  %343 = vperm.xlu1 %3083, %v265_v48   ;;  %v2471_v0 = vld [vmem:[#allocation3 + $0x40] sm:$0xf]  ;;  %v2959_v1 = vld [vmem:[#allocation3 + $0x4c] sm:$0xf0]  ;;  %v2957_v2 = vld [vmem:[#allocation3 + $0x44] sm:$0xf] }
  0x24   :  { %1796 = vmatpush.bf16.xpose.msra.mxu3 %v121_v47  ;;  %v2452_v47 = vor.u32 %v2950_v42, %v2449_v43  ;;  %v2473_v3 = vld [vmem:[#allocation3 + $0x50] sm:$0xf0]  ;;  %v2479_v4 = vld [vmem:[#allocation3 + $0x48] sm:$0xf]  ;;  %v2960_v5 = vld [vmem:[#allocation3 + $0x54] sm:$0xf0] }
  0x25   :  { %v2480_v10 = vor.u32 %v2960_v5, %v2479_v4  ;;  %v272_v12 = vld [vmem:[%s4013_s2 + $0x50] sm:$0xff]  ;;  %v266_v13 = vld [vmem:[%s4013_s2 + $0x20] sm:$0xff]  ;;  %v275_v16 = vld [vmem:[%s4013_s2 + $0x68] sm:$0xff] }
  0x26   :  { %358 = vperm.xlu0 %3082, %v268_v61   ;;  %v274_v14 = vld [vmem:[%s4013_s2 + $0x60] sm:$0xff]  ;;  %348 = vperm.xlu2 %3084, %v266_v13   ;;  %v267_v17 = vld [vmem:[%s4013_s2 + $0x28] sm:$0xff]  ;;  %v2964_v23 = vld [vmem:[#allocation3 + $0x74] sm:$0xf0] }
  0x27   :  { %v2487_v15 = vld [vmem:[#allocation3 + $0x60] sm:$0xf]  ;;  %v2495_v22 = vld [vmem:[#allocation3 + $0x68] sm:$0xf]  ;;  %v2962_v24 = vld [vmem:[#allocation3 + $0x6c] sm:$0xf] }
  0x28   :  { %v2497_v25 = vld [vmem:[#allocation3 + $0x78] sm:$0xf0]  ;;  %v2496_v28 = vor.u32 %v2964_v23, %v2495_v22  ;;  %v278_v30 = vld [vmem:[%s4013_s2 + $0x80] sm:$0xff]  ;;  %v2967_v36 = vld [vmem:[#allocation3 + $0x8c] sm:$0xf0] }
  0x29   :  { %v2500_v29 = vor.u32 %v2962_v24, %v2497_v25  ;;  %v270_v31 = vld [vmem:[%s4013_s2 + $0x40] sm:$0xff]  ;;  %v283_v38 = vld [vmem:[%s4013_s2 + $0xa8] sm:$0xff]  ;;  %v2505_v39 = vld [vmem:[#allocation3 + $0x90] sm:$0xf0] }
  0x2a   :  { %1290 = vmatpush.bf16.xpose.msra.mxu0 %v114_v56  ;;  %1459 = vmatpush.bf16.xpose.msra.mxu1 %v115_v57  ;;  %v2465_v56 = vld [vmem:[#allocation3 + $0x38] sm:$0xf0]  ;;  %v2456_v57 = vor.u32 %v2955_v50, %v2455_v49  ;;  %v2965_v37 = vld [vmem:[#allocation3 + $0x84] sm:$0xf]  ;;  %v2511_v40 = vld [vmem:[#allocation3 + $0x88] sm:$0xf] }
  0x2b   :  { %1628 = vmatpush.bf16.xpose.msra.mxu2 %v116_v58  ;;  %v2460_v58 = vor.u32 %v2953_v51, %v2457_v52  ;;  %v2468_v60 = vor.u32 %v2954_v55, %v2465_v56  ;;  %363 = vperm.xlu1 %3083, %v269_v62   ;;  %v2968_v41 = vld [vmem:[#allocation3 + $0x94] sm:$0xf0]  ;;  %v2966_v42 = vld [vmem:[#allocation3 + $0x8c] sm:$0xf]  ;;  %v2513_v43 = vld [vmem:[#allocation3 + $0x98] sm:$0xf0] }
  0x2c   :  { %1797 = vmatpush.bf16.xpose.msra.mxu3 %v117_v59  ;;  %v2464_v59 = vor.u32 %v2956_v54, %v2463_v53  ;;  %v284_v48 = vld [vmem:[%s4013_s2 + $0xb0] sm:$0xff]  ;;  %v286_v50 = vld [vmem:[%s4013_s2 + $0xc0] sm:$0xff]  ;;  %v287_v52 = vld [vmem:[%s4013_s2 + $0xc8] sm:$0xff] }
  0x2d   :  { %v276_v49 = vld [vmem:[%s4013_s2 + $0x70] sm:$0xff]  ;;  %v2519_v51 = vld [vmem:[#allocation3 + $0xa0] sm:$0xf]  ;;  %v279_v53 = vld [vmem:[%s4013_s2 + $0x88] sm:$0xff] }
  0x2e   :  { %373 = vperm.xlu0 %3082, %v271_v63   ;;  %353 = vperm.xlu2 %3084, %v267_v17   ;;  %v2971_v54 = vld [vmem:[#allocation3 + $0xac] sm:$0xf0]  ;;  %v2969_v55 = vld [vmem:[#allocation3 + $0xa4] sm:$0xf]  ;;  %v289_v56 = vld [vmem:[%s4013_s2 + $0xd8] sm:$0xff] }
  0x2f   :  { %v2529_v61 = vld [vmem:[#allocation3 + $0xb8] sm:$0xf0]  ;;  %v2520_v62 = vor.u32 %v2971_v54, %v2519_v51  ;;  %v292_v4 = vld [vmem:[%s4013_s2 + $0xf0] sm:$0xff]  ;;  %v2974_v13 = vld [vmem:[#allocation3 + $0xcc] sm:$0xf] }
  0x30   :  { %v293_v5 = vld [vmem:[%s4013_s2 + $0xf8] sm:$0xff]  ;;  %v2551_v22 = vld [vmem:[#allocation3 + $0xe0] sm:$0xf]  ;;  %v2979_v23 = vld [vmem:[#allocation3 + $0xec] sm:$0xf0] }
  0x31   :  { %v2977_v24 = vld [vmem:[#allocation3 + $0xe4] sm:$0xf] }
  0x32   :  { %1291 = vmatpush.bf16.xpose.msra.mxu0 %v110_v6  ;;  %1460 = vmatpush.bf16.xpose.msra.mxu1 %v111_v7  ;;  %v2958_v6 = vld [vmem:[#allocation3 + $0x4c] sm:$0xf]  ;;  %v2481_v7 = vld [vmem:[#allocation3 + $0x58] sm:$0xf0]  ;;  %v298_v25 = vld [vmem:[%s4013_s2 + $0x120] sm:$0xff] }
  0x33   :  { %1629 = vmatpush.bf16.xpose.msra.mxu2 %v112_v8  ;;  %v2472_v8 = vor.u32 %v2959_v1, %v2471_v0  ;;  %v2484_v11 = vor.u32 %v2958_v6, %v2481_v7  ;;  %378 = vperm.xlu1 %3083, %v272_v12   ;;  %v285_v6 = vld [vmem:[%s4013_s2 + $0xb8] sm:$0xff]  ;;  %v2535_v7 = vld [vmem:[#allocation3 + $0xc0] sm:$0xf] }
  0x34   :  { %1798 = vmatpush.bf16.xpose.msra.mxu3 %v113_v9  ;;  %v2476_v9 = vor.u32 %v2957_v2, %v2473_v3  ;;  %v290_v2 = vld [vmem:[%s4013_s2 + $0xe0] sm:$0xff]  ;;  %v2976_v12 = vld [vmem:[#allocation3 + $0xd4] sm:$0xf0] }
  0x35   :  { %v282_v3 = vld [vmem:[%s4013_s2 + $0xa0] sm:$0xff] }
  0x36   :  { %388 = vperm.xlu0 %3082, %v274_v14   ;;  %368 = vperm.xlu2 %3084, %v270_v31   ;;  %v2545_v14 = vld [vmem:[#allocation3 + $0xd8] sm:$0xf0] }
  0x37   :  { %v2561_v31 = vld [vmem:[#allocation3 + $0xf8] sm:$0xf0] }
  0x3a   :  { %1292 = vmatpush.bf16.xpose.msra.mxu0 %v106_v18  ;;  %1461 = vmatpush.bf16.xpose.msra.mxu1 %v107_v19  ;;  %v2963_v18 = vld [vmem:[#allocation3 + $0x6c] sm:$0xf0]  ;;  %v2961_v19 = vld [vmem:[#allocation3 + $0x64] sm:$0xf] }
  0x3b   :  { %1630 = vmatpush.bf16.xpose.msra.mxu2 %v108_v20  ;;  %v277_v20 = vld [vmem:[%s4013_s2 + $0x78] sm:$0xff]  ;;  %393 = vperm.xlu1 %3083, %v275_v16   ;;  %v2488_v26 = vor.u32 %v2963_v18, %v2487_v15  ;;  %v2548_v18 = vor.u32 %v2974_v13, %v2545_v14  ;;  %v311_v13 = vld [vmem:[%s4013_s2 + $0x188] sm:$0xff]  ;;  %v2585_v14 = vld [vmem:[#allocation3 + $0x130] sm:$0xf0] }
  0x3c   :  { %1799 = vmatpush.bf16.xpose.msra.mxu3 %v109_v21  ;;  %v2489_v21 = vld [vmem:[#allocation3 + $0x70] sm:$0xf0] }
  0x3d   :  { %v2492_v27 = vor.u32 %v2961_v19, %v2489_v21  ;;  %v295_v19 = vld [vmem:[%s4013_s2 + $0x108] sm:$0xff]  ;;  %v288_v21 = vld [vmem:[%s4013_s2 + $0xd0] sm:$0xff] }
  0x3e   :  { %403 = vperm.xlu0 %3082, %v277_v20   ;;  %v296_v20 = vld [vmem:[%s4013_s2 + $0x110] sm:$0xff] }
  0x42   :  { %1293 = vmatpush.bf16.xpose.msra.mxu0 %v102_v32  ;;  %1462 = vmatpush.bf16.xpose.msra.mxu1 %v103_v33  ;;  %v280_v32 = vld [vmem:[%s4013_s2 + $0x90] sm:$0xff]  ;;  %v2503_v33 = vld [vmem:[#allocation3 + $0x80] sm:$0xf] }
  0x43   :  { %1631 = vmatpush.bf16.xpose.msra.mxu2 %v104_v34  ;;  %408 = vperm.xlu1 %3083, %v278_v30   ;;  %v281_v34 = vld [vmem:[%s4013_s2 + $0x98] sm:$0xff]  ;;  %v2978_v30 = vld [vmem:[#allocation3 + $0xec] sm:$0xf] }
  0x44   :  { %1800 = vmatpush.bf16.xpose.msra.mxu3 %v105_v35  ;;  %v273_v35 = vld [vmem:[%s4013_s2 + $0x58] sm:$0xff] }
  0x45   :  { %383 = vperm.xlu2 %3084, %v273_v35   ;;  %v291_v35 = vld [vmem:[%s4013_s2 + $0xe8] sm:$0xff] }
  0x46   :  { %418 = vperm.xlu0 %3082, %v280_v32   ;;  %v2552_v32 = vor.u32 %v2979_v23, %v2551_v22 }
  0x49   :  { %1294 = vmatmul.bf16.vlgmr.msra.gmra.mxu0 %v2440_v44  ;;  %1463 = vmatmul.bf16.vlgmr.msra.gmra.mxu1 %v2444_v45  ;;  %v2504_v44 = vor.u32 %v2967_v36, %v2503_v33  ;;  %v2508_v45 = vor.u32 %v2965_v37, %v2505_v39  ;;  %v2564_v36 = vor.u32 %v2978_v30, %v2561_v31  ;;  %v301_v37 = vld [vmem:[%s4013_s2 + $0x138] sm:$0xff]  ;;  %v294_v39 = vld [vmem:[%s4013_s2 + $0x100] sm:$0xff] }
  0x4a   :  { %1632 = vmatmul.bf16.vlgmr.msra.gmra.mxu2 %v2448_v46  ;;  %v2512_v46 = vor.u32 %v2968_v41, %v2511_v40  ;;  %v2567_v40 = vld [vmem:[#allocation3 + $0x100] sm:$0xf]  ;;  %v2983_v41 = vld [vmem:[#allocation3 + $0x10c] sm:$0xf0] }
  0x4b   :  { %1801 = vmatmul.bf16.vlgmr.msra.gmra.mxu3 %v2452_v47  ;;  %423 = vperm.xlu1 %3083, %v281_v34   ;;  %v2516_v47 = vor.u32 %v2966_v42, %v2513_v43  ;;  %v2981_v43 = vld [vmem:[#allocation3 + $0x104] sm:$0xf]  ;;  %v2568_v51 = vor.u32 %v2983_v41, %v2567_v40 }
  0x4d   :  { %398 = vperm.xlu2 %3084, %v276_v49   ;;  %v2982_v49 = vld [vmem:[#allocation3 + $0x10c] sm:$0xf] }
  0x4e   :  { %433 = vperm.xlu0 %3082, %v283_v38   ;;  %v302_v38 = vld [vmem:[%s4013_s2 + $0x140] sm:$0xff] }
  0x53   :  { %438 = vperm.xlu1 %3083, %v284_v48   ;;  %v2984_v48 = vld [vmem:[#allocation3 + $0x114] sm:$0xf0] }
  0x55   :  { %413 = vperm.xlu2 %3084, %v279_v53  }
  0x56   :  { %448 = vperm.xlu0 %3082, %v286_v50   ;;  %v2577_v50 = vld [vmem:[#allocation3 + $0x118] sm:$0xf0] }
  0x59   :  { %1299 = vmatmul.bf16.gmra.mxu0 %v2456_v57  ;;  %1468 = vmatmul.bf16.gmra.mxu1 %v2460_v58  ;;  %v2521_v57 = vld [vmem:[#allocation3 + $0xb0] sm:$0xf0]  ;;  %v2527_v58 = vld [vmem:[#allocation3 + $0xa8] sm:$0xf] }
  0x5a   :  { %1637 = vmatmul.bf16.gmra.mxu2 %v2464_v59  ;;  %v2972_v59 = vld [vmem:[#allocation3 + $0xb4] sm:$0xf0]  ;;  %v2524_v63 = vor.u32 %v2969_v55, %v2521_v57 }
  0x5b   :  { %1806 = vmatmul.bf16.gmra.mxu3 %v2468_v60  ;;  %v2970_v60 = vld [vmem:[#allocation3 + $0xac] sm:$0xf]  ;;  %453 = vperm.xlu1 %3083, %v287_v52   ;;  %v2528_v0 = vor.u32 %v2972_v59, %v2527_v58  ;;  %v297_v55 = vld [vmem:[%s4013_s2 + $0x118] sm:$0xff]  ;;  %v2580_v58 = vor.u32 %v2982_v49, %v2577_v50  ;;  %v2601_v50 = vld [vmem:[#allocation3 + $0x150] sm:$0xf0] }
  0x5c   :  { %v2532_v1 = vor.u32 %v2970_v60, %v2529_v61  ;;  %v307_v60 = vld [vmem:[%s4013_s2 + $0x168] sm:$0xff]  ;;  %v308_v61 = vld [vmem:[%s4013_s2 + $0x170] sm:$0xff]  ;;  %v317_v49 = vld [vmem:[%s4013_s2 + $0x1b8] sm:$0xff] }
  0x5d   :  { %428 = vperm.xlu2 %3084, %v282_v3   ;;  %v300_v3 = vld [vmem:[%s4013_s2 + $0x130] sm:$0xff] }
  0x5e   :  { %463 = vperm.xlu0 %3082, %v289_v56  }
  0x63   :  { %468 = vperm.xlu1 %3083, %v290_v2  }
  0x65   :  { %443 = vperm.xlu2 %3084, %v285_v6  }
  0x66   :  { %478 = vperm.xlu0 %3082, %v292_v4  }
  0x69   :  { %1304 = vmatmul.bf16.gmra.mxu0 %v2472_v8  ;;  %1473 = vmatmul.bf16.gmra.mxu1 %v2476_v9  ;;  %v2975_v8 = vld [vmem:[#allocation3 + $0xcc] sm:$0xf0]  ;;  %v2973_v9 = vld [vmem:[#allocation3 + $0xc4] sm:$0xf] }
  0x6a   :  { %1642 = vmatmul.bf16.gmra.mxu2 %v2480_v10  ;;  %v2537_v10 = vld [vmem:[#allocation3 + $0xd0] sm:$0xf0]  ;;  %v2536_v15 = vor.u32 %v2975_v8, %v2535_v7  ;;  %v2583_v8 = vld [vmem:[#allocation3 + $0x120] sm:$0xf] }
  0x6b   :  { %1811 = vmatmul.bf16.gmra.mxu3 %v2484_v11  ;;  %v2543_v11 = vld [vmem:[#allocation3 + $0xc8] sm:$0xf]  ;;  %483 = vperm.xlu1 %3083, %v293_v5   ;;  %v2540_v16 = vor.u32 %v2973_v9, %v2537_v10  ;;  %v2987_v9 = vld [vmem:[#allocation3 + $0x12c] sm:$0xf0] }
  0x6c   :  { %v2544_v17 = vor.u32 %v2976_v12, %v2543_v11  ;;  %v2985_v11 = vld [vmem:[#allocation3 + $0x124] sm:$0xf] }
  0x6d   :  { %458 = vperm.xlu2 %3084, %v288_v21   ;;  %v310_v12 = vld [vmem:[%s4013_s2 + $0x180] sm:$0xff] }
  0x6e   :  { %493 = vperm.xlu0 %3082, %v295_v19  }
  0x73   :  { %498 = vperm.xlu1 %3083, %v296_v20   ;;  %v2584_v20 = vor.u32 %v2987_v9, %v2583_v8 }
  0x75   :  { %473 = vperm.xlu2 %3084, %v291_v35  }
  0x76   :  { %508 = vperm.xlu0 %3082, %v298_v25  }
  0x79   :  { %1309 = vmatmul.bf16.gmra.mxu0 %v2488_v26  ;;  %1478 = vmatmul.bf16.gmra.mxu1 %v2492_v27  ;;  %v299_v26 = vld [vmem:[%s4013_s2 + $0x128] sm:$0xff]  ;;  %v2553_v27 = vld [vmem:[#allocation3 + $0xf0] sm:$0xf0] }
  0x7a   :  { %1647 = vmatmul.bf16.gmra.mxu2 %v2496_v28  ;;  %v2559_v28 = vld [vmem:[#allocation3 + $0xe8] sm:$0xf]  ;;  %v2556_v33 = vor.u32 %v2977_v24, %v2553_v27  ;;  %v2588_v24 = vor.u32 %v2985_v11, %v2585_v14 }
  0x7b   :  { %1816 = vmatmul.bf16.gmra.mxu3 %v2500_v29  ;;  %v2980_v29 = vld [vmem:[#allocation3 + $0xf4] sm:$0xf0]  ;;  %513 = vperm.xlu1 %3083, %v299_v26   ;;  %v303_v26 = vld [vmem:[%s4013_s2 + $0x148] sm:$0xff] }
  0x7c   :  { %v2560_v34 = vor.u32 %v2980_v29, %v2559_v28 }
  0x7d   :  { %488 = vperm.xlu2 %3084, %v294_v39   ;;  %v306_v39 = vld [vmem:[%s4013_s2 + $0x160] sm:$0xff] }
  0x7e   :  { %523 = vperm.xlu0 %3082, %v301_v37  }
  0x83   :  { %528 = vperm.xlu1 %3083, %v302_v38  }
  0x85   :  { %503 = vperm.xlu2 %3084, %v297_v55  }
  0x88   :  { %v329_v42 = vpop.permute.xlu0 %328 }
  0x89   :  { %1314 = vmatmul.bf16.gmra.mxu0 %v2504_v44  ;;  %1483 = vmatmul.bf16.gmra.mxu1 %v2508_v45  ;;  %v304_v44 = vld [vmem:[%s4013_s2 + $0x150] sm:$0xff]  ;;  %v305_v45 = vld [vmem:[%s4013_s2 + $0x158] sm:$0xff] }
  0x8a   :  { %1652 = vmatmul.bf16.gmra.mxu2 %v2512_v46  ;;  %v2569_v46 = vld [vmem:[#allocation3 + $0x110] sm:$0xf0]  ;;  %538 = vperm.xlu0 %3082, %v304_v44   ;;  %v2599_v44 = vld [vmem:[#allocation3 + $0x140] sm:$0xf] }
  0x8b   :  { %1821 = vmatmul.bf16.gmra.mxu3 %v2516_v47  ;;  %v2575_v47 = vld [vmem:[#allocation3 + $0x108] sm:$0xf]  ;;  %543 = vperm.xlu1 %3083, %v305_v45   ;;  %v2572_v53 = vor.u32 %v2981_v43, %v2569_v46  ;;  %v2991_v45 = vld [vmem:[#allocation3 + $0x14c] sm:$0xf0]  ;;  %v349_v46 = vpop.permute.xlu2 %348 }
  0x8c   :  { %v2576_v54 = vor.u32 %v2984_v48, %v2575_v47  ;;  %v2989_v47 = vld [vmem:[#allocation3 + $0x144] sm:$0xf]  ;;  %v316_v48 = vld [vmem:[%s4013_s2 + $0x1b0] sm:$0xff] }
  0x8d   :  { %518 = vperm.xlu2 %3084, %v300_v3   ;;  %v339_v10 = vpop.permute.xlu1 %338 }
  0x92   :  { %553 = vperm.xlu0 %3082, %v307_v60   ;;  %v2604_v60 = vor.u32 %v2989_v47, %v2601_v50  ;;  %v318_v50 = vld [vmem:[%s4013_s2 + $0x1c0] sm:$0xff] }
  0x93   :  { %558 = vperm.xlu1 %3083, %v308_v61  }
  0x95   :  { %533 = vperm.xlu2 %3084, %v303_v26   ;;  %v2625_v26 = vld [vmem:[#allocation3 + $0x178] sm:$0xf0] }
  0x99   :  { %1319 = vmatmul.bf16.gmra.mxu0 %v2520_v62  ;;  %1488 = vmatmul.bf16.gmra.mxu1 %v2524_v63  ;;  %v334_v62 = vpop.permute.xlu0 %333 }
  0x9a   :  { %1657 = vmatmul.bf16.gmra.mxu2 %v2528_v0  ;;  %568 = vperm.xlu0 %3082, %v310_v12   ;;  %v312_v12 = vld [vmem:[%s4013_s2 + $0x190] sm:$0xff] }
  0x9b   :  { %1826 = vmatmul.bf16.gmra.mxu3 %v2532_v1  ;;  %573 = vperm.xlu1 %3083, %v311_v13  }
  0x9d   :  { %548 = vperm.xlu2 %3084, %v306_v39  }
  0xa9   :  { %1324 = vmatmul.bf16.gmra.mxu0 %v2536_v15  ;;  %1493 = vmatmul.bf16.gmra.mxu1 %v2540_v16  ;;  %v2591_v15 = vld [vmem:[#allocation3 + $0x128] sm:$0xf]  ;;  %v2988_v16 = vld [vmem:[#allocation3 + $0x134] sm:$0xf0] }
  0xaa   :  { %1662 = vmatmul.bf16.gmra.mxu2 %v2544_v17  ;;  %v2986_v17 = vld [vmem:[#allocation3 + $0x12c] sm:$0xf]  ;;  %v2592_v25 = vor.u32 %v2988_v16, %v2591_v15 }
  0xab   :  { %1831 = vmatmul.bf16.gmra.mxu3 %v2548_v18  ;;  %v2593_v18 = vld [vmem:[#allocation3 + $0x138] sm:$0xf0] }
  0xac   :  { %v2596_v29 = vor.u32 %v2986_v17, %v2593_v18  ;;  %v2615_v17 = vld [vmem:[#allocation3 + $0x160] sm:$0xf]  ;;  %v2995_v18 = vld [vmem:[#allocation3 + $0x16c] sm:$0xf0] }
  0xb9   :  { %1329 = vmatmul.bf16.gmra.mxu0 %v2552_v32  ;;  %1498 = vmatmul.bf16.gmra.mxu1 %v2556_v33  ;;  %v313_v32 = vld [vmem:[%s4013_s2 + $0x198] sm:$0xff]  ;;  %v314_v33 = vld [vmem:[%s4013_s2 + $0x1a0] sm:$0xff] }
  0xba   :  { %1667 = vmatmul.bf16.gmra.mxu2 %v2560_v34  ;;  %583 = vperm.xlu0 %3082, %v313_v32   ;;  %v344_v34 = vpop.permute.xlu1 %343 }
  0xbb   :  { %1836 = vmatmul.bf16.gmra.mxu3 %v2564_v36  ;;  %588 = vperm.xlu1 %3083, %v314_v33  }
  0xc2   :  { %598 = vperm.xlu0 %3082, %v316_v48  }
  0xc3   :  { %603 = vperm.xlu1 %3083, %v317_v49  }
  0xc6   :  { %v1295_v52 = vpop.f32.mrf.mxu0  ;;  %v1464_v57 = vpop.f32.mrf.mxu1 }
  0xc7   :  { %v1296_v56 = vadd.f32 %v1295_v52, %v329_v42  ;;  %v2992_v52 = vld [vmem:[#allocation3 + $0x154] sm:$0xf0] }
  0xc9   :  { %v1465_v59 = vadd.f32 %v1464_v57, %v1296_v56  ;;  %1334 = vmatmul.bf16.gmra.mxu0 %v2568_v51  ;;  %1503 = vmatmul.bf16.gmra.mxu1 %v2572_v53  ;;  %v2607_v51 = vld [vmem:[#allocation3 + $0x148] sm:$0xf]  ;;  %v2990_v53 = vld [vmem:[#allocation3 + $0x14c] sm:$0xf]  ;;  %v2600_v56 = vor.u32 %v2991_v45, %v2599_v44  ;;  %v2154_v44 = vld [vmem:[%s4014_s3] sm:$0xff]  ;;  %v364_v45 = vpop.permute.xlu1 %363 }
  0xca   :  { %1672 = vmatmul.bf16.gmra.mxu2 %v2576_v54  ;;  %v2609_v54 = vld [vmem:[#allocation3 + $0x158] sm:$0xf0]  ;;  %v2608_v61 = vor.u32 %v2992_v52, %v2607_v51 }
  0xcb   :  { %1841 = vmatmul.bf16.gmra.mxu3 %v2580_v58 }
  0xcd   :  { %v1633_v63 = vpop.f32.mrf.mxu2 }
  0xce   :  { %v1634_v0 = vadd.f32 %v1633_v63, %v1465_v59  ;;  %v1802_v1 = vpop.f32.mrf.mxu3  ;;  %v1297_v2 = vpop.f32.mrf.mxu0 }
  0xcf   :  { %v1298_v4 = vadd.f32 %v1297_v2, %v334_v62  ;;  %v1466_v5 = vpop.f32.mrf.mxu1  ;;  %v309_v62 = vld [vmem:[%s4013_s2 + $0x178] sm:$0xff] }
  0xd0   :  { %v3630_v6 = vadd.f32 %v1802_v1, %v1634_v0  ;;  %v2612_v1 = vor.u32 %v2990_v53, %v2609_v54  ;;  %563 = vperm.xlu2 %3084, %v309_v62   ;;  %v3000_v62 = vld [vmem:[#allocation3 + $0x194] sm:$0xf0] }
  0xd1   :  { %v1467_v7 = vadd.f32 %v1466_v5, %v1298_v4  ;;  %v319_v4 = vld [vmem:[%s4013_s2 + $0x1c8] sm:$0xff]  ;;  %v320_v5 = vld [vmem:[%s4013_s2 + $0x1d0] sm:$0xff] }
  0xd2   :  { %613 = vperm.xlu0 %3082, %v319_v4   ;;  %618 = vperm.xlu1 %3083, %v320_v5  }
  0xd5   :  { %v1635_v19 = vpop.f32.mrf.mxu2 }
  0xd6   :  { %v1636_v21 = vadd.f32 %v1635_v19, %v1467_v7  ;;  %v1804_v22 = vpop.f32.mrf.mxu3  ;;  %v1300_v23 = vpop.f32.mrf.mxu0  ;;  %v2993_v19 = vld [vmem:[#allocation3 + $0x164] sm:$0xf] }
  0xd7   :  { %v1301_v27 = vadd.f32 %v1300_v23, %v339_v10  ;;  %v1469_v28 = vpop.f32.mrf.mxu1  ;;  %v354_v7 = vpop.permute.xlu2 %353  ;;  %v2623_v23 = vld [vmem:[#allocation3 + $0x168] sm:$0xf] }
  0xd8   :  { %v3641_v30 = vadd.f32 %v1804_v22, %v1636_v21  ;;  %578 = vperm.xlu2 %3084, %v312_v12   ;;  %v323_v21 = vld [vmem:[%s4013_s2 + $0x1e8] sm:$0xff]  ;;  %v2617_v22 = vld [vmem:[#allocation3 + $0x170] sm:$0xf0] }
  0xd9   :  { %v1470_v31 = vadd.f32 %v1469_v28, %v1301_v27  ;;  %1339 = vmatmul.bf16.gmra.mxu0 %v2584_v20  ;;  %1508 = vmatmul.bf16.gmra.mxu1 %v2588_v24  ;;  %v322_v20 = vld [vmem:[%s4013_s2 + $0x1e0] sm:$0xff]  ;;  %v2996_v24 = vld [vmem:[#allocation3 + $0x174] sm:$0xf0]  ;;  %v359_v27 = vpop.permute.xlu0 %358 }
  0xda   :  { %1677 = vmatmul.bf16.gmra.mxu2 %v2592_v25  ;;  %628 = vperm.xlu0 %3082, %v322_v20   ;;  %v2994_v25 = vld [vmem:[#allocation3 + $0x16c] sm:$0xf] }
  0xdb   :  { %1846 = vmatmul.bf16.gmra.mxu3 %v2596_v29  ;;  %633 = vperm.xlu1 %3083, %v323_v21   ;;  %v2616_v29 = vor.u32 %v2995_v18, %v2615_v17  ;;  %v2628_v39 = vor.u32 %v2994_v25, %v2625_v26  ;;  %v2159_v18 = vld [vmem:[%s4014_s3 + $0x28] sm:$0xff]  ;;  %v324_v25 = vld [vmem:[%s4013_s2 + $0x1f0] sm:$0xff] }
  0xdd   :  { %v1638_v35 = vpop.f32.mrf.mxu2 }
  0xde   :  { %v1639_v36 = vadd.f32 %v1638_v35, %v1470_v31  ;;  %v1807_v37 = vpop.f32.mrf.mxu3  ;;  %v1302_v38 = vpop.f32.mrf.mxu0  ;;  %v2624_v35 = vor.u32 %v2996_v24, %v2623_v23 }
  0xdf   :  { %v1303_v40 = vadd.f32 %v1302_v38, %v344_v34  ;;  %v1471_v41 = vpop.f32.mrf.mxu1  ;;  %v2620_v34 = vor.u32 %v2993_v19, %v2617_v22  ;;  %v2160_v19 = vld [vmem:[%s4014_s3 + $0x30] sm:$0xff] }
  0xe0   :  { %v3652_v42 = vadd.f32 %v1807_v37, %v1639_v36  ;;  %v315_v36 = vld [vmem:[%s4013_s2 + $0x1a8] sm:$0xff] }
  0xe1   :  { %v1472_v43 = vadd.f32 %v1471_v41, %v1303_v40  ;;  %593 = vperm.xlu2 %3084, %v315_v36   ;;  %v374_v20 = vpop.permute.xlu0 %373  ;;  %v2649_v36 = vld [vmem:[#allocation3 + $0x1b0] sm:$0xf0] }
  0xe3   :  { %2188 = vperm.xlu1 %3083, %v2154_v44  }
  0xe5   :  { %v1640_v55 = vpop.f32.mrf.mxu2 }
  0xe6   :  { %v1641_v57 = vadd.f32 %v1640_v55, %v1472_v43  ;;  %v1809_v58 = vpop.f32.mrf.mxu3  ;;  %v1305_v59 = vpop.f32.mrf.mxu0  ;;  %v325_v43 = vld [vmem:[%s4013_s2 + $0x1f8] sm:$0xff]  ;;  %v2631_v55 = vld [vmem:[#allocation3 + $0x180] sm:$0xf] }
  0xe7   :  { %v1306_v63 = vadd.f32 %v1305_v59, %v349_v46  ;;  %v1474_v0 = vpop.f32.mrf.mxu1  ;;  %643 = vperm.xlu0 %3082, %v325_v43   ;;  %v2157_v59 = vld [vmem:[%s4014_s3 + $0x18] sm:$0xff]  ;;  %v379_v43 = vpop.permute.xlu1 %378 }
  0xe8   :  { %v3663_v2 = vadd.f32 %v1809_v58, %v1641_v57  ;;  %v2997_v57 = vld [vmem:[#allocation3 + $0x184] sm:$0xf]  ;;  %v2156_v58 = vld [vmem:[%s4014_s3 + $0x10] sm:$0xff] }
  0xe9   :  { %v1475_v3 = vadd.f32 %v1474_v0, %v1306_v63  ;;  %1344 = vmatmul.bf16.gmra.mxu0 %v2600_v56  ;;  %1513 = vmatmul.bf16.gmra.mxu1 %v2604_v60  ;;  %v2999_v56 = vld [vmem:[#allocation3 + $0x18c] sm:$0xf0]  ;;  %v2633_v60 = vld [vmem:[#allocation3 + $0x190] sm:$0xf0]  ;;  %v2998_v63 = vld [vmem:[#allocation3 + $0x18c] sm:$0xf] }
  0xea   :  { %1682 = vmatmul.bf16.gmra.mxu2 %v2608_v61  ;;  %608 = vperm.xlu2 %3084, %v318_v50   ;;  %v2639_v61 = vld [vmem:[#allocation3 + $0x188] sm:$0xf]  ;;  %v2641_v0 = vld [vmem:[#allocation3 + $0x198] sm:$0xf0]  ;;  %v2632_v4 = vor.u32 %v2999_v56, %v2631_v55 }
  0xeb   :  { %1851 = vmatmul.bf16.gmra.mxu3 %v2612_v1  ;;  %2203 = vperm.xlu1 %3083, %v2157_v59   ;;  %v369_v1 = vpop.permute.xlu2 %368  ;;  %v2166_v59 = vld [vmem:[%s4014_s3 + $0x60] sm:$0xff] }
  0xed   :  { %v1643_v8 = vpop.f32.mrf.mxu2 }
  0xee   :  { %v1644_v9 = vadd.f32 %v1643_v8, %v1475_v3  ;;  %v1812_v10 = vpop.f32.mrf.mxu3  ;;  %v1307_v11 = vpop.f32.mrf.mxu0 }
  0xef   :  { %v1308_v13 = vadd.f32 %v1307_v11, %v354_v7  ;;  %v1476_v14 = vpop.f32.mrf.mxu1  ;;  %2198 = vperm.xlu0 %3082, %v2156_v58   ;;  %v321_v11 = vld [vmem:[%s4013_s2 + $0x1d8] sm:$0xff] }
  0xf0   :  { %v3674_v15 = vadd.f32 %v1812_v10, %v1644_v9  ;;  %v2636_v9 = vor.u32 %v2997_v57, %v2633_v60  ;;  %v2640_v10 = vor.u32 %v3000_v62, %v2639_v61  ;;  %v2165_v58 = vld [vmem:[%s4014_s3 + $0x58] sm:$0xff] }
  0xf1   :  { %v1477_v16 = vadd.f32 %v1476_v14, %v1308_v13  ;;  %v2644_v14 = vor.u32 %v2998_v63, %v2641_v0 }
  0xf2   :  { %623 = vperm.xlu2 %3084, %v321_v11   ;;  %v2168_v11 = vld [vmem:[%s4014_s3 + $0x70] sm:$0xff] }
  0xf3   :  { %2218 = vperm.xlu1 %3083, %v2160_v19   ;;  %v384_v60 = vpop.permute.xlu2 %383  ;;  %v2673_v19 = vld [vmem:[#allocation3 + $0x1d8] sm:$0xf0] }
  0xf5   :  { %v1645_v28 = vpop.f32.mrf.mxu2 }
  0xf6   :  { %v1646_v31 = vadd.f32 %v1645_v28, %v1477_v16  ;;  %v1814_v32 = vpop.f32.mrf.mxu3  ;;  %v1310_v33 = vpop.f32.mrf.mxu0 }
  0xf7   :  { %v1311_v37 = vadd.f32 %v1310_v33, %v359_v27  ;;  %v1479_v38 = vpop.f32.mrf.mxu1  ;;  %2213 = vperm.xlu0 %3082, %v2159_v18   ;;  %v3001_v33 = vld [vmem:[#allocation3 + $0x1a4] sm:$0xf]  ;;  %v3006_v18 = vld [vmem:[#allocation3 + $0x1cc] sm:$0xf] }
  0xf8   :  { %v3685_v40 = vadd.f32 %v1814_v32, %v1646_v31  ;;  %v2647_v31 = vld [vmem:[#allocation3 + $0x1a0] sm:$0xf]  ;;  %v3003_v32 = vld [vmem:[#allocation3 + $0x1ac] sm:$0xf0] }
  0xf9   :  { %v1480_v41 = vadd.f32 %v1479_v38, %v1311_v37  ;;  %1349 = vmatmul.bf16.gmra.mxu0 %v2616_v29  ;;  %1518 = vmatmul.bf16.gmra.mxu1 %v2620_v34  ;;  %v2162_v34 = vld [vmem:[%s4014_s3 + $0x40] sm:$0xff]  ;;  %v2655_v37 = vld [vmem:[#allocation3 + $0x1a8] sm:$0xf]  ;;  %v3004_v38 = vld [vmem:[#allocation3 + $0x1b4] sm:$0xf0] }
  0xfa   :  { %1687 = vmatmul.bf16.gmra.mxu2 %v2624_v35  ;;  %638 = vperm.xlu2 %3084, %v324_v25   ;;  %v2163_v35 = vld [vmem:[%s4014_s3 + $0x48] sm:$0xff]  ;;  %v2656_v50 = vor.u32 %v3004_v38, %v2655_v37  ;;  %v2172_v37 = vld [vmem:[%s4014_s3 + $0x90] sm:$0xff]  ;;  %v394_v38 = vpop.permute.xlu1 %393 }
  0xfb   :  { %1856 = vmatmul.bf16.gmra.mxu3 %v2628_v39  ;;  %v3002_v39 = vld [vmem:[#allocation3 + $0x1ac] sm:$0xf]  ;;  %2233 = vperm.xlu1 %3083, %v2163_v35  }
  0xfd   :  { %v1648_v46 = vpop.f32.mrf.mxu2 }
  0xfe   :  { %v1649_v47 = vadd.f32 %v1648_v46, %v1480_v41  ;;  %v1817_v48 = vpop.f32.mrf.mxu3  ;;  %v1312_v49 = vpop.f32.mrf.mxu0  ;;  %v2657_v41 = vld [vmem:[#allocation3 + $0x1b8] sm:$0xf0] }
  0xff   :  { %v1313_v51 = vadd.f32 %v1312_v49, %v364_v45  ;;  %v1481_v52 = vpop.f32.mrf.mxu1  ;;  %2228 = vperm.xlu0 %3082, %v2162_v34   ;;  %v2648_v45 = vor.u32 %v3003_v32, %v2647_v31  ;;  %v2652_v49 = vor.u32 %v3001_v33, %v2649_v36  ;;  %v2660_v55 = vor.u32 %v3002_v39, %v2657_v41  ;;  %v2171_v36 = vld [vmem:[%s4014_s3 + $0x88] sm:$0xff] }
 0x100   :  { %v3696_v53 = vadd.f32 %v1817_v48, %v1649_v47  ;;  %v2676_v33 = vor.u32 %v3006_v18, %v2673_v19  ;;  %v2178_v18 = vld [vmem:[%s4014_s3 + $0xc0] sm:$0xff] }
 0x101   :  { %v1482_v54 = vadd.f32 %v1481_v52, %v1313_v51  ;;  %v2155_v51 = vld [vmem:[%s4014_s3 + $0x8] sm:$0xff] }
 0x102   :  { %2193 = vperm.xlu2 %3084, %v2155_v51   ;;  %v3011_v51 = vld [vmem:[#allocation3 + $0x1ec] sm:$0xf0] }
 0x103   :  { %2248 = vperm.xlu1 %3083, %v2166_v59   ;;  %v3012_v59 = vld [vmem:[#allocation3 + $0x1f4] sm:$0xf0] }
 0x105   :  { %v1650_v3 = vpop.f32.mrf.mxu2 }
 0x106   :  { %v1651_v5 = vadd.f32 %v1650_v3, %v1482_v54  ;;  %v1819_v7 = vpop.f32.mrf.mxu3  ;;  %v1315_v8 = vpop.f32.mrf.mxu0 }
 0x107   :  { %v1316_v12 = vadd.f32 %v1315_v8, %v369_v1  ;;  %v1484_v13 = vpop.f32.mrf.mxu1  ;;  %2243 = vperm.xlu0 %3082, %v2165_v58   ;;  %v2158_v1 = vld [vmem:[%s4014_s3 + $0x20] sm:$0xff]  ;;  %v2687_v58 = vld [vmem:[#allocation3 + $0x1e8] sm:$0xf] }
 0x108   :  { %v3707_v16 = vadd.f32 %v1819_v7, %v1651_v5  ;;  %v2663_v8 = vld [vmem:[#allocation3 + $0x1c0] sm:$0xf] }
 0x109   :  { %v1485_v17 = vadd.f32 %v1484_v13, %v1316_v12  ;;  %1354 = vmatmul.bf16.gmra.mxu0 %v2632_v4  ;;  %1523 = vmatmul.bf16.gmra.mxu1 %v2636_v9  ;;  %v3007_v9 = vld [vmem:[#allocation3 + $0x1cc] sm:$0xf0]  ;;  %v2169_v12 = vld [vmem:[%s4014_s3 + $0x78] sm:$0xff]  ;;  %v2665_v13 = vld [vmem:[#allocation3 + $0x1d0] sm:$0xf0] }
 0x10a   :  { %1692 = vmatmul.bf16.gmra.mxu2 %v2640_v10  ;;  %2208 = vperm.xlu2 %3084, %v2158_v1   ;;  %v3005_v10 = vld [vmem:[#allocation3 + $0x1c4] sm:$0xf] }
 0x10b   :  { %1861 = vmatmul.bf16.gmra.mxu3 %v2644_v14  ;;  %v2671_v14 = vld [vmem:[#allocation3 + $0x1c8] sm:$0xf]  ;;  %2263 = vperm.xlu1 %3083, %v2169_v12  }
 0x10d   :  { %v1653_v21 = vpop.f32.mrf.mxu2 }
 0x10e   :  { %v1654_v22 = vadd.f32 %v1653_v21, %v1485_v17  ;;  %v1822_v23 = vpop.f32.mrf.mxu3  ;;  %v1317_v24 = vpop.f32.mrf.mxu0  ;;  %v3008_v17 = vld [vmem:[#allocation3 + $0x1d4] sm:$0xf0] }
 0x10f   :  { %v1318_v26 = vadd.f32 %v1317_v24, %v374_v20  ;;  %v1486_v27 = vpop.f32.mrf.mxu1  ;;  %2258 = vperm.xlu0 %3082, %v2168_v11   ;;  %v389_v20 = vpop.permute.xlu0 %388 }
 0x110   :  { %v3718_v28 = vadd.f32 %v1822_v23, %v1654_v22  ;;  %v2664_v22 = vor.u32 %v3007_v9, %v2663_v8  ;;  %v2688_v8 = vor.u32 %v3012_v59, %v2687_v58  ;;  %v2167_v9 = vld [vmem:[%s4014_s3 + $0x68] sm:$0xff] }
 0x111   :  { %v1487_v29 = vadd.f32 %v1486_v27, %v1318_v26  ;;  %v2668_v26 = vor.u32 %v3005_v10, %v2665_v13  ;;  %v2672_v27 = vor.u32 %v3008_v17, %v2671_v14  ;;  %v2177_v17 = vld [vmem:[%s4014_s3 + $0xb8] sm:$0xff] }
 0x113   :  { %2278 = vperm.xlu1 %3083, %v2172_v37   ;;  %v2697_v37 = vld [vmem:[#allocation3 + $0x210] sm:$0xf0] }
 0x115   :  { %v1655_v44 = vpop.f32.mrf.mxu2 }
 0x116   :  { %v1656_v46 = vadd.f32 %v1655_v44, %v1487_v29  ;;  %v1824_v47 = vpop.f32.mrf.mxu3  ;;  %v1320_v48 = vpop.f32.mrf.mxu0  ;;  %v2161_v29 = vld [vmem:[%s4014_s3 + $0x38] sm:$0xff] }
 0x117   :  { %v1321_v52 = vadd.f32 %v1320_v48, %v379_v43  ;;  %v1489_v54 = vpop.f32.mrf.mxu1  ;;  %2223 = vperm.xlu2 %3084, %v2161_v29   ;;  %2273 = vperm.xlu0 %3082, %v2171_v36   ;;  %v404_v19 = vpop.permute.xlu0 %403  ;;  %v2181_v36 = vld [vmem:[%s4014_s3 + $0xd8] sm:$0xff] }
 0x118   :  { %v3729_v56 = vadd.f32 %v1824_v47, %v1656_v46 }
 0x119   :  { %v1490_v57 = vadd.f32 %v1489_v54, %v1321_v52  ;;  %1359 = vmatmul.bf16.gmra.mxu0 %v2648_v45  ;;  %1528 = vmatmul.bf16.gmra.mxu1 %v2652_v49  ;;  %v2164_v45 = vld [vmem:[%s4014_s3 + $0x50] sm:$0xff]  ;;  %v3009_v52 = vld [vmem:[#allocation3 + $0x1e4] sm:$0xf] }
 0x11a   :  { %1697 = vmatmul.bf16.gmra.mxu2 %v2656_v50  ;;  %v2679_v50 = vld [vmem:[#allocation3 + $0x1e0] sm:$0xf] }
 0x11b   :  { %1866 = vmatmul.bf16.gmra.mxu3 %v2660_v55  ;;  %v2174_v54 = vld [vmem:[%s4014_s3 + $0xa0] sm:$0xff]  ;;  %v2175_v55 = vld [vmem:[%s4014_s3 + $0xa8] sm:$0xff] }
 0x11c   :  { %2293 = vperm.xlu1 %3083, %v2175_v55  }
 0x11d   :  { %v1658_v61 = vpop.f32.mrf.mxu2 }
 0x11e   :  { %v1659_v62 = vadd.f32 %v1658_v61, %v1490_v57  ;;  %v1827_v63 = vpop.f32.mrf.mxu3  ;;  %v1322_v0 = vpop.f32.mrf.mxu0  ;;  %v2681_v57 = vld [vmem:[#allocation3 + $0x1f0] sm:$0xf0]  ;;  %v2689_v61 = vld [vmem:[#allocation3 + $0x1f8] sm:$0xf0] }
 0x11f   :  { %v1323_v3 = vadd.f32 %v1322_v0, %v384_v60  ;;  %v1491_v4 = vpop.f32.mrf.mxu1  ;;  %2238 = vperm.xlu2 %3084, %v2164_v45   ;;  %2288 = vperm.xlu0 %3082, %v2174_v54   ;;  %v3010_v60 = vld [vmem:[#allocation3 + $0x1ec] sm:$0xf]  ;;  %v2680_v0 = vor.u32 %v3011_v51, %v2679_v50  ;;  %v2173_v54 = vld [vmem:[%s4014_s3 + $0x98] sm:$0xff] }
 0x120   :  { %v3740_v5 = vadd.f32 %v1827_v63, %v1659_v62  ;;  %v399_v62 = vpop.permute.xlu2 %398  ;;  %v2692_v12 = vor.u32 %v3010_v60, %v2689_v61 }
 0x121   :  { %v1492_v7 = vadd.f32 %v1491_v4, %v1323_v3 }
 0x124   :  { %2308 = vperm.xlu1 %3083, %v2178_v18   ;;  %v2711_v18 = vld [vmem:[#allocation3 + $0x220] sm:$0xf] }
 0x125   :  { %v1660_v21 = vpop.f32.mrf.mxu2 }
 0x126   :  { %v1661_v23 = vadd.f32 %v1660_v21, %v1492_v7  ;;  %v1829_v24 = vpop.f32.mrf.mxu3  ;;  %v1325_v25 = vpop.f32.mrf.mxu0  ;;  %v2684_v7 = vor.u32 %v3009_v52, %v2681_v57 }
 0x127   :  { %v1326_v31 = vadd.f32 %v1325_v25, %v389_v20  ;;  %v1494_v32 = vpop.f32.mrf.mxu1  ;;  %2253 = vperm.xlu2 %3084, %v2167_v9   ;;  %2303 = vperm.xlu0 %3082, %v2177_v17  }
 0x128   :  { %v3751_v34 = vadd.f32 %v1829_v24, %v1661_v23  ;;  %v2170_v24 = vld [vmem:[%s4014_s3 + $0x80] sm:$0xff]  ;;  %v414_v55 = vpop.permute.xlu2 %413 }
 0x129   :  { %v1495_v35 = vadd.f32 %v1494_v32, %v1326_v31  ;;  %1364 = vmatmul.bf16.gmra.mxu0 %v2664_v22  ;;  %1533 = vmatmul.bf16.gmra.mxu1 %v2668_v26  ;;  %v2695_v31 = vld [vmem:[#allocation3 + $0x200] sm:$0xf]  ;;  %v3015_v32 = vld [vmem:[#allocation3 + $0x20c] sm:$0xf0] }
 0x12a   :  { %1702 = vmatmul.bf16.gmra.mxu2 %v2672_v27 }
 0x12b   :  { %1871 = vmatmul.bf16.gmra.mxu3 %v2676_v33  ;;  %v3013_v33 = vld [vmem:[#allocation3 + $0x204] sm:$0xf] }
 0x12c   :  { %2323 = vperm.xlu1 %3083, %v2181_v36   ;;  %v2700_v51 = vor.u32 %v3013_v33, %v2697_v37  ;;  %v2179_v37 = vld [vmem:[%s4014_s3 + $0xc8] sm:$0xff] }
 0x12d   :  { %v1663_v39 = vpop.f32.mrf.mxu2 }
 0x12e   :  { %v1664_v41 = vadd.f32 %v1663_v39, %v1495_v35  ;;  %v1832_v43 = vpop.f32.mrf.mxu3  ;;  %v1327_v44 = vpop.f32.mrf.mxu0  ;;  %v2180_v35 = vld [vmem:[%s4014_s3 + $0xd0] sm:$0xff]  ;;  %v3016_v39 = vld [vmem:[#allocation3 + $0x214] sm:$0xf0] }
 0x12f   :  { %v1328_v46 = vadd.f32 %v1327_v44, %v394_v38  ;;  %v1496_v47 = vpop.f32.mrf.mxu1  ;;  %2268 = vperm.xlu2 %3084, %v2170_v24   ;;  %v2703_v38 = vld [vmem:[#allocation3 + $0x208] sm:$0xf]  ;;  %2318 = vperm.xlu0 %3082, %v2180_v35   ;;  %v409_v44 = vpop.permute.xlu1 %408  ;;  %v3018_v24 = vld [vmem:[#allocation3 + $0x22c] sm:$0xf] }
 0x130   :  { %v3762_v48 = vadd.f32 %v1832_v43, %v1664_v41  ;;  %v3014_v41 = vld [vmem:[#allocation3 + $0x20c] sm:$0xf]  ;;  %v2705_v43 = vld [vmem:[#allocation3 + $0x218] sm:$0xf0]  ;;  %v2704_v52 = vor.u32 %v3016_v39, %v2703_v38 }
 0x131   :  { %v1497_v49 = vadd.f32 %v1496_v47, %v1328_v46  ;;  %v2696_v46 = vor.u32 %v3015_v32, %v2695_v31  ;;  %v2708_v59 = vor.u32 %v3014_v41, %v2705_v43 }
 0x135   :  { %v1665_v63 = vpop.f32.mrf.mxu2 }
 0x136   :  { %v1666_v1 = vadd.f32 %v1665_v63, %v1497_v49  ;;  %v1834_v3 = vpop.f32.mrf.mxu3  ;;  %v1330_v4 = vpop.f32.mrf.mxu0  ;;  %v2184_v63 = vld [vmem:[%s4014_s3 + $0xf0] sm:$0xff] }
 0x137   :  { %v1331_v10 = vadd.f32 %v1330_v4, %v399_v62  ;;  %v1499_v11 = vpop.f32.mrf.mxu1  ;;  %2283 = vperm.xlu2 %3084, %v2173_v54   ;;  %v2183_v62 = vld [vmem:[%s4014_s3 + $0xe8] sm:$0xff]  ;;  %2338 = vperm.xlu1 %3083, %v2184_v63   ;;  %v424_v9 = vpop.permute.xlu1 %423  ;;  %v2182_v54 = vld [vmem:[%s4014_s3 + $0xe0] sm:$0xff]  ;;  %v3023_v63 = vld [vmem:[#allocation3 + $0x24c] sm:$0xf0] }
 0x138   :  { %v3773_v13 = vadd.f32 %v1834_v3, %v1666_v1  ;;  %2333 = vperm.xlu0 %3082, %v2183_v62   ;;  %v2727_v62 = vld [vmem:[#allocation3 + $0x240] sm:$0xf] }
 0x139   :  { %v1500_v14 = vadd.f32 %v1499_v11, %v1331_v10  ;;  %1369 = vmatmul.bf16.gmra.mxu0 %v2680_v0  ;;  %1538 = vmatmul.bf16.gmra.mxu1 %v2684_v7  ;;  %v419_v0 = vpop.permute.xlu0 %418 }
 0x13a   :  { %1707 = vmatmul.bf16.gmra.mxu2 %v2688_v8  ;;  %v2176_v8 = vld [vmem:[%s4014_s3 + $0xb0] sm:$0xff] }
 0x13b   :  { %1876 = vmatmul.bf16.gmra.mxu3 %v2692_v12 }
 0x13d   :  { %v1668_v20 = vpop.f32.mrf.mxu2 }
 0x13e   :  { %v1669_v21 = vadd.f32 %v1668_v20, %v1500_v14  ;;  %v1837_v22 = vpop.f32.mrf.mxu3  ;;  %v1332_v23 = vpop.f32.mrf.mxu0  ;;  %v3017_v20 = vld [vmem:[#allocation3 + $0x224] sm:$0xf] }
 0x13f   :  { %v1333_v25 = vadd.f32 %v1332_v23, %v404_v19  ;;  %v1501_v26 = vpop.f32.mrf.mxu1  ;;  %2298 = vperm.xlu2 %3084, %v2176_v8   ;;  %v429_v14 = vpop.permute.xlu2 %428  ;;  %v3019_v19 = vld [vmem:[#allocation3 + $0x22c] sm:$0xf0]  ;;  %v3020_v23 = vld [vmem:[#allocation3 + $0x234] sm:$0xf0]  ;;  %v3022_v8 = vld [vmem:[#allocation3 + $0x24c] sm:$0xf] }
 0x140   :  { %v3784_v27 = vadd.f32 %v1837_v22, %v1669_v21  ;;  %v2713_v21 = vld [vmem:[#allocation3 + $0x230] sm:$0xf0]  ;;  %v2719_v22 = vld [vmem:[#allocation3 + $0x228] sm:$0xf] }
 0x141   :  { %v1502_v29 = vadd.f32 %v1501_v26, %v1333_v25  ;;  %v2721_v25 = vld [vmem:[#allocation3 + $0x238] sm:$0xf0]  ;;  %v2716_v35 = vor.u32 %v3017_v20, %v2713_v21  ;;  %v2720_v36 = vor.u32 %v3020_v23, %v2719_v22  ;;  %v434_v38 = vpop.permute.xlu0 %433 }
 0x142   :  { %v2724_v43 = vor.u32 %v3018_v24, %v2721_v25  ;;  %v2185_v23 = vld [vmem:[%s4014_s3 + $0xf8] sm:$0xff] }
 0x145   :  { %v1670_v45 = vpop.f32.mrf.mxu2 }
 0x146   :  { %v1671_v47 = vadd.f32 %v1670_v45, %v1502_v29  ;;  %v1839_v49 = vpop.f32.mrf.mxu3  ;;  %v1335_v50 = vpop.f32.mrf.mxu0  ;;  %v2712_v29 = vor.u32 %v3019_v19, %v2711_v18 }
 0x147   :  { %v1336_v57 = vadd.f32 %v1335_v50, %v409_v44  ;;  %v1504_v58 = vpop.f32.mrf.mxu1  ;;  %2313 = vperm.xlu2 %3084, %v2179_v37   ;;  %v3813_v45 = vpop.permute.xlu1 %438 }
 0x148   :  { %v3795_v60 = vadd.f32 %v1839_v49, %v1671_v47  ;;  %v3815_v47 = vpop.permute.xlu2 %443 }
 0x149   :  { %v1505_v61 = vadd.f32 %v1504_v58, %v1336_v57  ;;  %1374 = vmatmul.bf16.gmra.mxu0 %v2696_v46  ;;  %1543 = vmatmul.bf16.gmra.mxu1 %v2700_v51 }
 0x14a   :  { %1712 = vmatmul.bf16.gmra.mxu2 %v2704_v52 }
 0x14b   :  { %1881 = vmatmul.bf16.gmra.mxu3 %v2708_v59  ;;  %v3822_v59 = vpop.permute.xlu0 %448 }
 0x14d   :  { %v1673_v1 = vpop.f32.mrf.mxu2 }
 0x14e   :  { %v1674_v3 = vadd.f32 %v1673_v1, %v1505_v61  ;;  %v1842_v4 = vpop.f32.mrf.mxu3  ;;  %v1337_v7 = vpop.f32.mrf.mxu0 }
 0x14f   :  { %v1338_v10 = vadd.f32 %v1337_v7, %v414_v55  ;;  %v1506_v11 = vpop.f32.mrf.mxu1  ;;  %2328 = vperm.xlu2 %3084, %v2182_v54   ;;  %v3824_v1 = vpop.permute.xlu1 %453  ;;  %v3024_v7 = vld [vmem:[#allocation3 + $0x254] sm:$0xf0]  ;;  %v2745_v54 = vld [vmem:[#allocation3 + $0x270] sm:$0xf0] }
 0x150   :  { %v3806_v12 = vadd.f32 %v1842_v4, %v1674_v3  ;;  %v2729_v3 = vld [vmem:[#allocation3 + $0x250] sm:$0xf0]  ;;  %v2735_v4 = vld [vmem:[#allocation3 + $0x248] sm:$0xf] }
 0x151   :  { %v1507_v17 = vadd.f32 %v1506_v11, %v1338_v10  ;;  %v2737_v10 = vld [vmem:[#allocation3 + $0x258] sm:$0xf0]  ;;  %v3826_v11 = vpop.permute.xlu2 %458  ;;  %v2736_v22 = vor.u32 %v3024_v7, %v2735_v4 }
 0x155   :  { %v1675_v26 = vpop.f32.mrf.mxu2 }
 0x156   :  { %v1676_v31 = vadd.f32 %v1675_v26, %v1507_v17  ;;  %v1844_v32 = vpop.f32.mrf.mxu3  ;;  %v1340_v33 = vpop.f32.mrf.mxu0  ;;  %v2728_v17 = vor.u32 %v3023_v63, %v2727_v62  ;;  %v2740_v26 = vor.u32 %v3022_v8, %v2737_v10  ;;  %v2753_v62 = vld [vmem:[#allocation3 + $0x278] sm:$0xf0] }
 0x157   :  { %v1341_v39 = vadd.f32 %v1340_v33, %v419_v0  ;;  %v1509_v41 = vpop.f32.mrf.mxu1  ;;  %v3021_v0 = vld [vmem:[#allocation3 + $0x244] sm:$0xf]  ;;  %2343 = vperm.xlu2 %3084, %v2185_v23   ;;  %v3835_v33 = vpop.permute.xlu1 %468 }
 0x158   :  { %v3811_v44 = vadd.f32 %v1844_v32, %v1676_v31  ;;  %v2732_v21 = vor.u32 %v3021_v0, %v2729_v3  ;;  %v3833_v32 = vpop.permute.xlu0 %463 }
 0x159   :  { %v1510_v46 = vadd.f32 %v1509_v41, %v1341_v39  ;;  %1379 = vmatmul.bf16.gmra.mxu0 %v2712_v29  ;;  %1548 = vmatmul.bf16.gmra.mxu1 %v2716_v35  ;;  %v3837_v41 = vpop.permute.xlu2 %473 }
 0x15a   :  { %1717 = vmatmul.bf16.gmra.mxu2 %v2720_v36 }
 0x15b   :  { %1886 = vmatmul.bf16.gmra.mxu3 %v2724_v43 }
 0x15d   :  { %v1678_v49 = vpop.f32.mrf.mxu2 }
 0x15e   :  { %v1679_v50 = vadd.f32 %v1678_v49, %v1510_v46  ;;  %v1847_v51 = vpop.f32.mrf.mxu3  ;;  %v1342_v52 = vpop.f32.mrf.mxu0 }
 0x15f   :  { %v1343_v55 = vadd.f32 %v1342_v52, %v424_v9  ;;  %v1511_v57 = vpop.f32.mrf.mxu1  ;;  %v3025_v52 = vld [vmem:[#allocation3 + $0x264] sm:$0xf] }
 0x160   :  { %v3820_v58 = vadd.f32 %v1847_v51, %v1679_v50  ;;  %v2743_v50 = vld [vmem:[#allocation3 + $0x260] sm:$0xf]  ;;  %v3027_v51 = vld [vmem:[#allocation3 + $0x26c] sm:$0xf0]  ;;  %v3841_v63 = vpop.permute.xlu0 %478 }
 0x161   :  { %v1512_v61 = vadd.f32 %v1511_v57, %v1343_v55  ;;  %v2751_v55 = vld [vmem:[#allocation3 + $0x268] sm:$0xf]  ;;  %v3028_v57 = vld [vmem:[#allocation3 + $0x274] sm:$0xf0]  ;;  %v2744_v3 = vor.u32 %v3027_v51, %v2743_v50  ;;  %v2761_v51 = vld [vmem:[#allocation3 + $0x290] sm:$0xf0] }
 0x162   :  { %v2752_v10 = vor.u32 %v3028_v57, %v2751_v55  ;;  %v3030_v55 = vld [vmem:[#allocation3 + $0x28c] sm:$0xf]  ;;  %v2769_v57 = vld [vmem:[#allocation3 + $0x298] sm:$0xf0] }
 0x165   :  { %v1680_v9 = vpop.f32.mrf.mxu2 }
 0x166   :  { %v1681_v18 = vadd.f32 %v1680_v9, %v1512_v61  ;;  %v1849_v19 = vpop.f32.mrf.mxu3  ;;  %v1345_v20 = vpop.f32.mrf.mxu0  ;;  %v3026_v61 = vld [vmem:[#allocation3 + $0x26c] sm:$0xf] }
 0x167   :  { %v1346_v24 = vadd.f32 %v1345_v20, %v429_v14  ;;  %v1514_v25 = vpop.f32.mrf.mxu1  ;;  %v3843_v9 = vpop.permute.xlu1 %483 }
 0x168   :  { %v3831_v29 = vadd.f32 %v1849_v19, %v1681_v18  ;;  %v2756_v19 = vor.u32 %v3026_v61, %v2753_v62 }
 0x169   :  { %v1515_v31 = vadd.f32 %v1514_v25, %v1346_v24  ;;  %1384 = vmatmul.bf16.gmra.mxu0 %v2728_v17  ;;  %1553 = vmatmul.bf16.gmra.mxu1 %v2732_v21  ;;  %v3848_v21 = vpop.permute.xlu2 %488 }
 0x16a   :  { %4017 = vst [vmem:[#allocation9_spill] sm:$0xff] %v3831_v29  ;;  %1722 = vmatmul.bf16.gmra.mxu2 %v2736_v22 }
 0x16b   :  { %1891 = vmatmul.bf16.gmra.mxu3 %v2740_v26 }
 0x16d   :  { %v1683_v35 = vpop.f32.mrf.mxu2 }
 0x16e   :  { %v1684_v36 = vadd.f32 %v1683_v35, %v1515_v31  ;;  %v1852_v37 = vpop.f32.mrf.mxu3  ;;  %v1347_v39 = vpop.f32.mrf.mxu0 }
 0x16f   :  { %v1348_v14 = vadd.f32 %v1347_v39, %v434_v38  ;;  %v1516_v43 = vpop.f32.mrf.mxu1  ;;  %v2748_v38 = vor.u32 %v3025_v52, %v2745_v54  ;;  %v3850_v31 = vpop.permute.xlu0 %493  ;;  %v2767_v52 = vld [vmem:[#allocation3 + $0x288] sm:$0xf]  ;;  %v3032_v54 = vld [vmem:[#allocation3 + $0x294] sm:$0xf0] }
 0x170   :  { %v3839_v46 = vadd.f32 %v1852_v37, %v1684_v36  ;;  %v3855_v37 = vpop.permute.xlu1 %498 }
 0x171   :  { %v1517_v49 = vadd.f32 %v1516_v43, %v1348_v14  ;;  %v2759_v14 = vld [vmem:[#allocation3 + $0x280] sm:$0xf]  ;;  %v3031_v43 = vld [vmem:[#allocation3 + $0x28c] sm:$0xf0]  ;;  %v3857_v50 = vpop.permute.xlu2 %503 }
 0x172   :  { %4018 = vst [vmem:[#allocation10_spill] sm:$0xff] %v3839_v46  ;;  %v2760_v62 = vor.u32 %v3031_v43, %v2759_v14  ;;  %v2775_v43 = vld [vmem:[#allocation3 + $0x2a0] sm:$0xf] }
 0x175   :  { %v1685_v0 = vpop.f32.mrf.mxu2 }
 0x176   :  { %v1686_v4 = vadd.f32 %v1685_v0, %v1517_v49  ;;  %v1854_v7 = vpop.f32.mrf.mxu3  ;;  %v1350_v8 = vpop.f32.mrf.mxu0  ;;  %v3029_v49 = vld [vmem:[#allocation3 + $0x284] sm:$0xf] }
 0x177   :  { %v1351_v17 = vadd.f32 %v1350_v8, %v3813_v45  ;;  %v1519_v18 = vpop.f32.mrf.mxu1 }
 0x178   :  { %v3846_v20 = vadd.f32 %v1854_v7, %v1686_v4  ;;  %v2764_v4 = vor.u32 %v3029_v49, %v2761_v51  ;;  %v2768_v7 = vor.u32 %v3032_v54, %v2767_v52  ;;  %v3035_v49 = vld [vmem:[#allocation3 + $0x2ac] sm:$0xf0]  ;;  %v3033_v51 = vld [vmem:[#allocation3 + $0x2a4] sm:$0xf]  ;;  %v2777_v54 = vld [vmem:[#allocation3 + $0x2b0] sm:$0xf0] }
 0x179   :  { %v1520_v22 = vadd.f32 %v1519_v18, %v1351_v17  ;;  %1389 = vmatmul.bf16.gmra.mxu0 %v2744_v3  ;;  %1558 = vmatmul.bf16.gmra.mxu1 %v2748_v38  ;;  %v3862_v18 = vpop.permute.xlu0 %508 }
 0x17a   :  { %4019 = vst [vmem:[#allocation11_spill] sm:$0xff] %v3846_v20  ;;  %1727 = vmatmul.bf16.gmra.mxu2 %v2752_v10  ;;  %v2772_v10 = vor.u32 %v3030_v55, %v2769_v57  ;;  %v2783_v55 = vld [vmem:[#allocation3 + $0x2a8] sm:$0xf]  ;;  %v3036_v57 = vld [vmem:[#allocation3 + $0x2b4] sm:$0xf0] }
 0x17b   :  { %1896 = vmatmul.bf16.gmra.mxu3 %v2756_v19 }
 0x17d   :  { %v1688_v23 = vpop.f32.mrf.mxu2 }
 0x17e   :  { %v1689_v24 = vadd.f32 %v1688_v23, %v1520_v22  ;;  %v1857_v25 = vpop.f32.mrf.mxu3  ;;  %v1352_v26 = vpop.f32.mrf.mxu0 }
 0x17f   :  { %v1353_v35 = vadd.f32 %v1352_v26, %v3815_v47  ;;  %v1521_v45 = vpop.f32.mrf.mxu1  ;;  %v3864_v22 = vpop.permute.xlu1 %513 }
 0x180   :  { %v3853_v36 = vadd.f32 %v1857_v25, %v1689_v24  ;;  %v3866_v23 = vpop.permute.xlu2 %518 }
 0x181   :  { %v1522_v39 = vadd.f32 %v1521_v45, %v1353_v35  ;;  %v3871_v52 = vpop.permute.xlu0 %523 }
 0x182   :  { %4020 = vst [vmem:[#allocation12_spill] sm:$0xff] %v3853_v36 }
 0x185   :  { %v1690_v61 = vpop.f32.mrf.mxu2 }
 0x186   :  { %v1691_v0 = vadd.f32 %v1690_v61, %v1522_v39  ;;  %v1859_v47 = vpop.f32.mrf.mxu3  ;;  %v1355_v3 = vpop.f32.mrf.mxu0  ;;  %v3034_v61 = vld [vmem:[#allocation3 + $0x2ac] sm:$0xf] }
 0x187   :  { %v1356_v8 = vadd.f32 %v1355_v3, %v3822_v59  ;;  %v1524_v38 = vpop.f32.mrf.mxu1  ;;  %v2776_v3 = vor.u32 %v3035_v49, %v2775_v43 }
 0x188   :  { %v3860_v17 = vadd.f32 %v1859_v47, %v1691_v0  ;;  %v3873_v0 = vpop.permute.xlu1 %528 }
 0x189   :  { %v1525_v19 = vadd.f32 %v1524_v38, %v1356_v8  ;;  %1394 = vmatmul.bf16.gmra.mxu0 %v2760_v62  ;;  %1563 = vmatmul.bf16.gmra.mxu1 %v2764_v4  ;;  %v2785_v62 = vld [vmem:[#allocation3 + $0x2b8] sm:$0xf0]  ;;  %v2780_v8 = vor.u32 %v3033_v51, %v2777_v54  ;;  %v2784_v38 = vor.u32 %v3036_v57, %v2783_v55 }
 0x18a   :  { %4021 = vst [vmem:[#allocation13_spill] sm:$0xff] %v3860_v17  ;;  %1732 = vmatmul.bf16.gmra.mxu2 %v2768_v7 }
 0x18b   :  { %1901 = vmatmul.bf16.gmra.mxu3 %v2772_v10  ;;  %v3875_v10 = vpop.permute.xlu2 %533 }
 0x18d   :  { %v1693_v24 = vpop.f32.mrf.mxu2 }
 0x18e   :  { %v1694_v25 = vadd.f32 %v1693_v24, %v1525_v19  ;;  %v1862_v26 = vpop.f32.mrf.mxu3  ;;  %v1357_v35 = vpop.f32.mrf.mxu0 }
 0x18f   :  { %v1358_v59 = vadd.f32 %v1357_v35, %v3824_v1  ;;  %v1526_v45 = vpop.f32.mrf.mxu1 }
 0x190   :  { %v3869_v39 = vadd.f32 %v1862_v26, %v1694_v25  ;;  %v2788_v25 = vor.u32 %v3034_v61, %v2785_v62  ;;  %v3882_v51 = vpop.permute.xlu1 %543  ;;  %v2791_v62 = vld [vmem:[#allocation3 + $0x2c0] sm:$0xf] }
 0x191   :  { %v1527_v14 = vadd.f32 %v1526_v45, %v1358_v59  ;;  %v3880_v59 = vpop.permute.xlu0 %538 }
 0x192   :  { %4022 = vst [vmem:[#allocation14_spill] sm:$0xff] %v3869_v39 }
 0x193   :  { %v3887_v57 = vpop.permute.xlu2 %548 }
 0x195   :  { %v1695_v47 = vpop.f32.mrf.mxu2 }
 0x196   :  { %v1696_v4 = vadd.f32 %v1695_v47, %v1527_v14  ;;  %v1864_v1 = vpop.f32.mrf.mxu3  ;;  %v1360_v7 = vpop.f32.mrf.mxu0  ;;  %v3039_v47 = vld [vmem:[#allocation3 + $0x2cc] sm:$0xf0] }
 0x197   :  { %v1361_v19 = vadd.f32 %v1360_v7, %v3826_v11  ;;  %v1529_v24 = vpop.f32.mrf.mxu1  ;;  %v3040_v7 = vld [vmem:[#allocation3 + $0x2d4] sm:$0xf0] }
 0x198   :  { %v3878_v26 = vadd.f32 %v1864_v1, %v1696_v4  ;;  %v2793_v4 = vld [vmem:[#allocation3 + $0x2d0] sm:$0xf0]  ;;  %v2799_v1 = vld [vmem:[#allocation3 + $0x2c8] sm:$0xf] }
 0x199   :  { %v1530_v35 = vadd.f32 %v1529_v24, %v1361_v19  ;;  %1399 = vmatmul.bf16.gmra.mxu0 %v2776_v3  ;;  %1568 = vmatmul.bf16.gmra.mxu1 %v2780_v8  ;;  %v3037_v3 = vld [vmem:[#allocation3 + $0x2c4] sm:$0xf]  ;;  %v3038_v8 = vld [vmem:[#allocation3 + $0x2cc] sm:$0xf]  ;;  %v2792_v24 = vor.u32 %v3039_v47, %v2791_v62 }
 0x19a   :  { %4023 = vst [vmem:[#allocation15_spill] sm:$0xff] %v3878_v26  ;;  %1737 = vmatmul.bf16.gmra.mxu2 %v2784_v38  ;;  %v2801_v38 = vld [vmem:[#allocation3 + $0x2d8] sm:$0xf0]  ;;  %v3894_v26 = vpop.permute.xlu1 %558 }
 0x19b   :  { %1906 = vmatmul.bf16.gmra.mxu3 %v2788_v25  ;;  %v3896_v62 = vpop.permute.xlu2 %563 }
 0x19d   :  { %v1698_v45 = vpop.f32.mrf.mxu2 }
 0x19e   :  { %v1699_v14 = vadd.f32 %v1698_v45, %v1530_v35  ;;  %v1867_v43 = vpop.f32.mrf.mxu3  ;;  %v1362_v49 = vpop.f32.mrf.mxu0 }
 0x19f   :  { %v1363_v54 = vadd.f32 %v1362_v49, %v3833_v32  ;;  %v1531_v11 = vpop.f32.mrf.mxu1  ;;  %v2796_v32 = vor.u32 %v3037_v3, %v2793_v4  ;;  %v2800_v49 = vor.u32 %v3040_v7, %v2799_v1 }
 0x1a0   :  { %v3885_v55 = vadd.f32 %v1867_v43, %v1699_v14 }
 0x1a1   :  { %v1532_v61 = vadd.f32 %v1531_v11, %v1363_v54  ;;  %v3890_v54 = vpop.permute.xlu0 %553 }
 0x1a2   :  { %4024 = vst [vmem:[#allocation16_spill] sm:$0xff] %v3885_v55  ;;  %v2804_v55 = vor.u32 %v3038_v8, %v2801_v38 }
 0x1a5   :  { %v1700_v19 = vpop.f32.mrf.mxu2 }
 0x1a6   :  { %v1701_v25 = vadd.f32 %v1700_v19, %v1532_v61  ;;  %v1869_v35 = vpop.f32.mrf.mxu3  ;;  %v1365_v45 = vpop.f32.mrf.mxu0  ;;  %v2807_v19 = vld [vmem:[#allocation3 + $0x2e0] sm:$0xf] }
 0x1a7   :  { %v1366_v14 = vadd.f32 %v1365_v45, %v3835_v33  ;;  %v1534_v43 = vpop.f32.mrf.mxu1  ;;  %v2809_v45 = vld [vmem:[#allocation3 + $0x2f0] sm:$0xf0] }
 0x1a8   :  { %v3892_v11 = vadd.f32 %v1869_v35, %v1701_v25  ;;  %v3043_v25 = vld [vmem:[#allocation3 + $0x2ec] sm:$0xf0]  ;;  %v3903_v35 = vpop.permute.xlu1 %573 }
 0x1a9   :  { %v1535_v39 = vadd.f32 %v1534_v43, %v1366_v14  ;;  %1404 = vmatmul.bf16.gmra.mxu0 %v2792_v24  ;;  %1573 = vmatmul.bf16.gmra.mxu1 %v2796_v32  ;;  %v3901_v38 = vpop.permute.xlu0 %568  ;;  %v3041_v24 = vld [vmem:[#allocation3 + $0x2e4] sm:$0xf]  ;;  %v2815_v32 = vld [vmem:[#allocation3 + $0x2e8] sm:$0xf]  ;;  %v3905_v14 = vpop.permute.xlu2 %578 }
 0x1aa   :  { %4025 = vst [vmem:[#allocation17_spill] sm:$0xff] %v3892_v11  ;;  %1742 = vmatmul.bf16.gmra.mxu2 %v2800_v49  ;;  %v3042_v49 = vld [vmem:[#allocation3 + $0x2ec] sm:$0xf] }
 0x1ab   :  { %1911 = vmatmul.bf16.gmra.mxu3 %v2804_v55  ;;  %v3044_v55 = vld [vmem:[#allocation3 + $0x2f4] sm:$0xf0] }
 0x1ad   :  { %v1703_v61 = vpop.f32.mrf.mxu2 }
 0x1ae   :  { %v1704_v47 = vadd.f32 %v1703_v61, %v1535_v39  ;;  %v1872_v3 = vpop.f32.mrf.mxu3  ;;  %v1367_v4 = vpop.f32.mrf.mxu0  ;;  %v2817_v39 = vld [vmem:[#allocation3 + $0x2f8] sm:$0xf0] }
 0x1af   :  { %v1368_v33 = vadd.f32 %v1367_v4, %v3837_v41  ;;  %v1536_v1 = vpop.f32.mrf.mxu1  ;;  %v2808_v41 = vor.u32 %v3043_v25, %v2807_v19  ;;  %v2812_v4 = vor.u32 %v3041_v24, %v2809_v45  ;;  %v2820_v11 = vor.u32 %v3042_v49, %v2817_v39  ;;  %v2823_v49 = vld [vmem:[#allocation3 + $0x300] sm:$0xf]  ;;  %v3047_v39 = vld [vmem:[#allocation3 + $0x30c] sm:$0xf0] }
 0x1b0   :  { %v3899_v7 = vadd.f32 %v1872_v3, %v1704_v47  ;;  %v3912_v46 = vpop.permute.xlu1 %588 }
 0x1b1   :  { %v1537_v8 = vadd.f32 %v1536_v1, %v1368_v33  ;;  %v2816_v33 = vor.u32 %v3044_v55, %v2815_v32  ;;  %v3910_v20 = vpop.permute.xlu0 %583  ;;  %v3914_v45 = vpop.permute.xlu2 %593 }
 0x1b2   :  { %4026 = vst [vmem:[#allocation18_spill] sm:$0xff] %v3899_v7 }
 0x1b3   :  { %4028 = vst [vmem:[#allocation20_spill] sm:$0xff] %v3914_v45 }
 0x1b5   :  { %v1705_v43 = vpop.f32.mrf.mxu2 }
 0x1b6   :  { %v1706_v61 = vadd.f32 %v1705_v43, %v1537_v8  ;;  %v1874_v47 = vpop.f32.mrf.mxu3  ;;  %v1370_v3 = vpop.f32.mrf.mxu0  ;;  %v3045_v43 = vld [vmem:[#allocation3 + $0x304] sm:$0xf] }
 0x1b7   :  { %v1371_v1 = vadd.f32 %v1370_v3, %v3841_v63  ;;  %v1539_v7 = vpop.f32.mrf.mxu1  ;;  %v2833_v3 = vld [vmem:[#allocation3 + $0x318] sm:$0xf0] }
 0x1b8   :  { %v3908_v17 = vadd.f32 %v1874_v47, %v1706_v61  ;;  %v3048_v61 = vld [vmem:[#allocation3 + $0x314] sm:$0xf0]  ;;  %v3046_v47 = vld [vmem:[#allocation3 + $0x30c] sm:$0xf] }
 0x1b9   :  { %v1540_v36 = vadd.f32 %v1539_v7, %v1371_v1  ;;  %1409 = vmatmul.bf16.gmra.mxu0 %v2808_v41  ;;  %1578 = vmatmul.bf16.gmra.mxu1 %v2812_v4  ;;  %v2831_v41 = vld [vmem:[#allocation3 + $0x308] sm:$0xf] }
 0x1ba   :  { %4027 = vst [vmem:[#allocation19_spill] sm:$0xff] %v3908_v17  ;;  %1747 = vmatmul.bf16.gmra.mxu2 %v2816_v33  ;;  %v2832_v45 = vor.u32 %v3048_v61, %v2831_v41 }
 0x1bb   :  { %1916 = vmatmul.bf16.gmra.mxu3 %v2820_v11  ;;  %v2825_v11 = vld [vmem:[#allocation3 + $0x310] sm:$0xf0] }
 0x1bc   :  { %v2828_v17 = vor.u32 %v3045_v43, %v2825_v11 }
 0x1bd   :  { %v1708_v8 = vpop.f32.mrf.mxu2 }
 0x1be   :  { %v1709_v19 = vadd.f32 %v1708_v8, %v1540_v36  ;;  %v1877_v25 = vpop.f32.mrf.mxu3  ;;  %v1372_v24 = vpop.f32.mrf.mxu0  ;;  %v2824_v36 = vor.u32 %v3047_v39, %v2823_v49 }
 0x1bf   :  { %v1373_v63 = vadd.f32 %v1372_v24, %v3843_v9  ;;  %v1541_v32 = vpop.f32.mrf.mxu1  ;;  %v3919_v9 = vpop.permute.xlu0 %598  ;;  %v2836_v24 = vor.u32 %v3046_v47, %v2833_v3  ;;  %v2839_v3 = vld [vmem:[#allocation3 + $0x320] sm:$0xf] }
 0x1c0   :  { %v3917_v55 = vadd.f32 %v1877_v25, %v1709_v19 }
 0x1c1   :  { %v1542_v7 = vadd.f32 %v1541_v32, %v1373_v63  ;;  %v3922_v63 = vpop.permute.xlu1 %603 }
 0x1c2   :  { %4029 = vst [vmem:[#allocation21_spill] sm:$0xff] %v3917_v55  ;;  %v3926_v55 = vpop.permute.xlu2 %608 }
 0x1c3   :  { %4030 = vst [vmem:[#allocation22_spill] sm:$0xff] %v3922_v63 }
 0x1c4   :  { %4032 = vst [vmem:[#allocation24_spill] sm:$0xff] %v3926_v55 }
 0x1c5   :  { %v1710_v4 = vpop.f32.mrf.mxu2 }
 0x1c6   :  { %v1711_v33 = vadd.f32 %v1710_v4, %v1542_v7  ;;  %v1879_v1 = vpop.f32.mrf.mxu3  ;;  %v1375_v8 = vpop.f32.mrf.mxu0 }
 0x1c7   :  { %v1376_v19 = vadd.f32 %v1375_v8, %v3848_v21  ;;  %v1544_v25 = vpop.f32.mrf.mxu1  ;;  %v3929_v61 = vpop.permute.xlu0 %613  ;;  %v2847_v8 = vld [vmem:[#allocation3 + $0x328] sm:$0xf] }
 0x1c8   :  { %v3924_v32 = vadd.f32 %v1879_v1, %v1711_v33  ;;  %4033 = vst [vmem:[#allocation25_spill] sm:$0xff] %v3929_v61  ;;  %v3051_v1 = vld [vmem:[#allocation3 + $0x32c] sm:$0xf0] }
 0x1c9   :  { %v1545_v29 = vadd.f32 %v1544_v25, %v1376_v19  ;;  %1414 = vmatmul.bf16.gmra.mxu0 %v2824_v36  ;;  %1583 = vmatmul.bf16.gmra.mxu1 %v2828_v17  ;;  %v3931_v4 = vpop.permute.xlu1 %618  ;;  %v3049_v36 = vld [vmem:[#allocation3 + $0x324] sm:$0xf]  ;;  %v3050_v19 = vld [vmem:[#allocation3 + $0x32c] sm:$0xf]  ;;  %v2849_v25 = vld [vmem:[#allocation3 + $0x338] sm:$0xf0] }
 0x1ca   :  { %4031 = vst [vmem:[#allocation23_spill] sm:$0xff] %v3924_v32  ;;  %1752 = vmatmul.bf16.gmra.mxu2 %v2832_v45  ;;  %v3933_v17 = vpop.permute.xlu2 %623  ;;  %v2841_v45 = vld [vmem:[#allocation3 + $0x330] sm:$0xf0]  ;;  %v2852_v32 = vor.u32 %v3050_v19, %v2849_v25 }
 0x1cb   :  { %1921 = vmatmul.bf16.gmra.mxu3 %v2836_v24  ;;  %4034 = vst [vmem:[#allocation26_spill] sm:$0xff] %v3931_v4  ;;  %v2840_v24 = vor.u32 %v3051_v1, %v2839_v3 }
 0x1cc   :  { %4035 = vst [vmem:[#allocation27_spill] sm:$0xff] %v3933_v17 }
 0x1cd   :  { %v1713_v7 = vpop.f32.mrf.mxu2 }
 0x1ce   :  { %v1714_v49 = vadd.f32 %v1713_v7, %v1545_v29  ;;  %v1882_v39 = vpop.f32.mrf.mxu3  ;;  %v1377_v43 = vpop.f32.mrf.mxu0  ;;  %v3052_v29 = vld [vmem:[#allocation3 + $0x334] sm:$0xf0] }
 0x1cf   :  { %v1378_v11 = vadd.f32 %v1377_v43, %v3850_v31  ;;  %v1546_v21 = vpop.f32.mrf.mxu1  ;;  %v2844_v43 = vor.u32 %v3049_v36, %v2841_v45  ;;  %v3937_v55 = vpop.permute.xlu0 %628 }
 0x1d0   :  { %v1883_v41 = vadd.f32 %v1882_v39, %v1714_v49  ;;  %4036 = vst [vmem:[#allocation28_spill] sm:$0xff] %v3937_v55 }
 0x1d1   :  { %v1547_v47 = vadd.f32 %v1546_v21, %v1378_v11  ;;  %v2848_v11 = vor.u32 %v3052_v29, %v2847_v8  ;;  %v3939_v3 = vpop.permute.xlu1 %633 }
 0x1d2   :  { %v1994_v33 = vmul.f32 0.5, %v1883_v41  ;;  %4037 = vst [vmem:[#allocation29_spill] sm:$0xff] %v3939_v3  ;;  %v3941_v1 = vpop.permute.xlu2 %638 }
 0x1d3   :  { %4038 = vst [vmem:[#allocation30_spill] sm:$0xff] %v3941_v1 }
 0x1d4   :  { %3085 = vtanh.f32 %v1994_v33 }
 0x1d5   :  { %v1715_v31 = vpop.f32.mrf.mxu2  ;;  %3087 = vtanh.f32 %v3630_v6 }
 0x1d6   :  { %v1716_v7 = vadd.f32 %v1715_v31, %v1547_v47  ;;  %v1884_v49 = vpop.f32.mrf.mxu3  ;;  %v1380_v39 = vpop.f32.mrf.mxu0 }
 0x1d7   :  { %v1381_v21 = vadd.f32 %v1380_v39, %v3855_v37  ;;  %v1549_v41 = vpop.f32.mrf.mxu1  ;;  %v3053_v39 = vld [vmem:[#allocation3 + $0x344] sm:$0xf] }
 0x1d8   :  { %v1885_v17 = vadd.f32 %v1884_v49, %v1716_v7 }
 0x1d9   :  { %v1550_v4 = vadd.f32 %v1549_v41, %v1381_v21  ;;  %1419 = vmatmul.bf16.gmra.mxu0 %v2840_v24  ;;  %1588 = vmatmul.bf16.gmra.mxu1 %v2844_v43  ;;  %v3055_v24 = vld [vmem:[#allocation3 + $0x34c] sm:$0xf0]  ;;  %v2857_v43 = vld [vmem:[#allocation3 + $0x350] sm:$0xf0]  ;;  %v2863_v21 = vld [vmem:[#allocation3 + $0x348] sm:$0xf] }
 0x1da   :  { %v3086_v61 = vpop.eup %3085  ;;  %v1995_v33 = vmul.f32 0.5, %v1885_v17  ;;  %1757 = vmatmul.bf16.gmra.mxu2 %v2848_v11  ;;  %v3056_v41 = vld [vmem:[#allocation3 + $0x354] sm:$0xf0]  ;;  %v2194_v3 = vpop.permute.xlu2 %2193 }
 0x1db   :  { %v2058_v47 = vmul.f32 0.5, %v3086_v61  ;;  %1926 = vmatmul.bf16.gmra.mxu3 %v2852_v32  ;;  %v3088_v45 = vpop.eup %3087  ;;  %v2855_v32 = vld [vmem:[#allocation3 + $0x340] sm:$0xf] }
 0x1dc   :  { %3089 = vtanh.f32 %v1995_v33  ;;  %v2865_v33 = vld [vmem:[#allocation3 + $0x358] sm:$0xf0] }
 0x1dd   :  { %v2090_v37 = vadd.f32 0.5, %v2058_v47  ;;  %v1718_v36 = vpop.f32.mrf.mxu2  ;;  %3091 = vtanh.f32 %v3641_v30  ;;  %v3945_v47 = vpop.permute.xlu0 %643 }
 0x1de   :  { %v1719_v6 = vadd.f32 %v1718_v36, %v1550_v4  ;;  %v1887_v8 = vpop.f32.mrf.mxu3  ;;  %v1382_v29 = vpop.f32.mrf.mxu0  ;;  %v3054_v4 = vld [vmem:[#allocation3 + $0x34c] sm:$0xf]  ;;  %4039 = vst [vmem:[#allocation31_spill] sm:$0xff] %v3945_v47  ;;  %v2856_v36 = vor.u32 %v3055_v24, %v2855_v32 }
 0x1df   :  { %v2122_v19 = vmul.f32 %v3088_v45, %v2090_v37  ;;  %v1383_v17 = vadd.f32 %v1382_v29, %v3857_v50  ;;  %v1551_v25 = vpop.f32.mrf.mxu1  ;;  %v2860_v29 = vor.u32 %v3053_v39, %v2857_v43  ;;  %v2868_v1 = vor.u32 %v3054_v4, %v2865_v33 }
 0x1e0   :  { %v1888_v31 = vadd.f32 %v1887_v8, %v1719_v6 }
 0x1e1   :  { %v1552_v61 = vadd.f32 %v1551_v25, %v1383_v17  ;;  %v2864_v17 = vor.u32 %v3056_v41, %v2863_v21 }
 0x1e2   :  { %v3090_v7 = vpop.eup %3089  ;;  %v1996_v49 = vmul.f32 0.5, %v1888_v31 }
 0x1e3   :  { %v2059_v11 = vmul.f32 0.5, %v3090_v7  ;;  %v3092_v30 = vpop.eup %3091 }
 0x1e4   :  { %3093 = vtanh.f32 %v1996_v49  ;;  %v2189_v49 = vpop.permute.xlu1 %2188 }
 0x1e5   :  { %v2091_v50 = vadd.f32 0.5, %v2059_v11  ;;  %v1720_v37 = vpop.f32.mrf.mxu2  ;;  %3095 = vtanh.f32 %v3652_v42  ;;  %v2346_v47 = vmul.f32 %v2189_v49, %v2122_v19 }
 0x1e6   :  { %v1721_v45 = vadd.f32 %v1720_v37, %v1552_v61  ;;  %v1889_v6 = vpop.f32.mrf.mxu3  ;;  %v1385_v8 = vpop.f32.mrf.mxu0 }
 0x1e7   :  { %v2123_v25 = vmul.f32 %v3092_v30, %v2091_v50  ;;  %v1386_v31 = vadd.f32 %v1385_v8, %v3862_v18  ;;  %v1554_v7 = vpop.f32.mrf.mxu1  ;;  %v2199_v50 = vpop.permute.xlu0 %2198  ;;  %v3059_v30 = vld [vmem:[#allocation3 + $0x36c] sm:$0xf0]  ;;  %v2873_v8 = vld [vmem:[#allocation3 + $0x370] sm:$0xf0] }
 0x1e8   :  { %v1890_v55 = vadd.f32 %v1889_v6, %v1721_v45  ;;  %v3057_v6 = vld [vmem:[#allocation3 + $0x364] sm:$0xf] }
 0x1e9   :  { %v2347_v11 = vmul.f32 %v2194_v3, %v2123_v25  ;;  %v1555_v63 = vadd.f32 %v1554_v7, %v1386_v31  ;;  %1424 = vmatmul.bf16.gmra.mxu0 %v2856_v36  ;;  %1593 = vmatmul.bf16.gmra.mxu1 %v2860_v29  ;;  %v3060_v25 = vld [vmem:[#allocation3 + $0x374] sm:$0xf0]  ;;  %v3058_v31 = vld [vmem:[#allocation3 + $0x36c] sm:$0xf] }
 0x1ea   :  { %v3094_v32 = vpop.eup %3093  ;;  %v1997_v61 = vmul.f32 0.5, %v1890_v55  ;;  %1762 = vmatmul.bf16.gmra.mxu2 %v2864_v17  ;;  %v2879_v17 = vld [vmem:[#allocation3 + $0x368] sm:$0xf] }
 0x1eb   :  { %v2378_v24 = vadd.f32 %v2347_v11, %v2346_v47  ;;  %v2060_v39 = vmul.f32 0.5, %v3094_v32  ;;  %1931 = vmatmul.bf16.gmra.mxu3 %v2868_v1  ;;  %v3096_v21 = vpop.eup %3095  ;;  %v2871_v47 = vld [vmem:[#allocation3 + $0x360] sm:$0xf] }
 0x1ec   :  { %3097 = vtanh.f32 %v1997_v61 }
 0x1ed   :  { %v2092_v18 = vadd.f32 0.5, %v2060_v39  ;;  %v1723_v43 = vpop.f32.mrf.mxu2  ;;  %3099 = vtanh.f32 %v3663_v2  ;;  %v2872_v2 = vor.u32 %v3059_v30, %v2871_v47 }
 0x1ee   :  { %v1724_v41 = vadd.f32 %v1723_v43, %v1555_v63  ;;  %v1892_v42 = vpop.f32.mrf.mxu3  ;;  %v1387_v4 = vpop.f32.mrf.mxu0  ;;  %v2880_v43 = vor.u32 %v3060_v25, %v2879_v17 }
 0x1ef   :  { %v2124_v33 = vmul.f32 %v3096_v21, %v2092_v18  ;;  %v1388_v19 = vadd.f32 %v1387_v4, %v3864_v22  ;;  %v1556_v3 = vpop.f32.mrf.mxu1  ;;  %v2881_v22 = vld [vmem:[#allocation3 + $0x378] sm:$0xf0]  ;;  %v2876_v18 = vor.u32 %v3057_v6, %v2873_v8  ;;  %v2204_v4 = vpop.permute.xlu1 %2203 }
 0x1f0   :  { %v1893_v55 = vadd.f32 %v1892_v42, %v1724_v41  ;;  %v2209_v17 = vpop.permute.xlu2 %2208 }
 0x1f1   :  { %v2348_v37 = vmul.f32 %v2199_v50, %v2124_v33  ;;  %v1557_v36 = vadd.f32 %v1556_v3, %v1388_v19 }
 0x1f2   :  { %v3098_v1 = vpop.eup %3097  ;;  %v1998_v45 = vmul.f32 0.5, %v1893_v55 }
 0x1f3   :  { %v2379_v29 = vadd.f32 %v2378_v24, %v2348_v37  ;;  %v2061_v63 = vmul.f32 0.5, %v3098_v1  ;;  %v3100_v11 = vpop.eup %3099  ;;  %v2884_v24 = vor.u32 %v3058_v31, %v2881_v22 }
 0x1f4   :  { %3101 = vtanh.f32 %v1998_v45 }
 0x1f5   :  { %v2093_v7 = vadd.f32 0.5, %v2061_v63  ;;  %v1725_v49 = vpop.f32.mrf.mxu2  ;;  %3103 = vtanh.f32 %v3674_v15 }
 0x1f6   :  { %v1726_v32 = vadd.f32 %v1725_v49, %v1557_v36  ;;  %v1894_v61 = vpop.f32.mrf.mxu3  ;;  %v1390_v39 = vpop.f32.mrf.mxu0 }
 0x1f7   :  { %v2125_v21 = vmul.f32 %v3100_v11, %v2093_v7  ;;  %v1391_v41 = vadd.f32 %v1390_v39, %v3866_v23  ;;  %v1559_v42 = vpop.f32.mrf.mxu1  ;;  %v3063_v7 = vld [vmem:[#allocation3 + $0x38c] sm:$0xf0]  ;;  %v3061_v11 = vld [vmem:[#allocation3 + $0x384] sm:$0xf] }
 0x1f8   :  { %v1895_v33 = vadd.f32 %v1894_v61, %v1726_v32  ;;  %v2889_v32 = vld [vmem:[#allocation3 + $0x390] sm:$0xf0] }
 0x1f9   :  { %v2349_v19 = vmul.f32 %v2204_v4, %v2125_v21  ;;  %v1560_v3 = vadd.f32 %v1559_v42, %v1391_v41  ;;  %1429 = vmatmul.bf16.gmra.mxu0 %v2872_v2  ;;  %1598 = vmatmul.bf16.gmra.mxu1 %v2876_v18  ;;  %v2895_v18 = vld [vmem:[#allocation3 + $0x388] sm:$0xf]  ;;  %v3062_v21 = vld [vmem:[#allocation3 + $0x38c] sm:$0xf] }
 0x1fa   :  { %v3102_v50 = vpop.eup %3101  ;;  %v1999_v55 = vmul.f32 0.5, %v1895_v33  ;;  %1767 = vmatmul.bf16.gmra.mxu2 %v2880_v43  ;;  %v3064_v43 = vld [vmem:[#allocation3 + $0x394] sm:$0xf0] }
 0x1fb   :  { %v2380_v37 = vadd.f32 %v2379_v29, %v2349_v19  ;;  %v2062_v36 = vmul.f32 0.5, %v3102_v50  ;;  %1936 = vmatmul.bf16.gmra.mxu3 %v2884_v24  ;;  %v3104_v23 = vpop.eup %3103  ;;  %v2887_v29 = vld [vmem:[#allocation3 + $0x380] sm:$0xf]  ;;  %v2896_v50 = vor.u32 %v3064_v43, %v2895_v18  ;;  %v3067_v18 = vld [vmem:[#allocation3 + $0x3ac] sm:$0xf0] }
 0x1fc   :  { %3105 = vtanh.f32 %v1999_v55 }
 0x1fd   :  { %v2094_v47 = vadd.f32 0.5, %v2062_v36  ;;  %v1728_v30 = vpop.f32.mrf.mxu2  ;;  %3107 = vtanh.f32 %v3685_v40  ;;  %v2888_v40 = vor.u32 %v3063_v7, %v2887_v29 }
 0x1fe   :  { %v1729_v1 = vadd.f32 %v1728_v30, %v1560_v3  ;;  %v1897_v45 = vpop.f32.mrf.mxu3  ;;  %v1392_v6 = vpop.f32.mrf.mxu0  ;;  %v2892_v3 = vor.u32 %v3061_v11, %v2889_v32 }
 0x1ff   :  { %v2126_v15 = vmul.f32 %v3104_v23, %v2094_v47  ;;  %v1393_v8 = vadd.f32 %v1392_v6, %v3871_v52  ;;  %v1561_v63 = vpop.f32.mrf.mxu1  ;;  %v2897_v52 = vld [vmem:[#allocation3 + $0x398] sm:$0xf0]  ;;  %v2214_v30 = vpop.permute.xlu0 %2213 }
 0x200   :  { %v1898_v25 = vadd.f32 %v1897_v45, %v1729_v1 }
 0x201   :  { %v2350_v31 = vmul.f32 %v2209_v17, %v2126_v15  ;;  %v1562_v22 = vadd.f32 %v1561_v63, %v1393_v8 }
 0x202   :  { %v3106_v49 = vpop.eup %3105  ;;  %v2000_v2 = vmul.f32 0.5, %v1898_v25 }
 0x203   :  { %v2381_v61 = vadd.f32 %v2380_v37, %v2350_v31  ;;  %v2063_v39 = vmul.f32 0.5, %v3106_v49  ;;  %v3108_v24 = vpop.eup %3107  ;;  %v2900_v37 = vor.u32 %v3062_v21, %v2897_v52  ;;  %v3065_v52 = vld [vmem:[#allocation3 + $0x3a4] sm:$0xf] }
 0x204   :  { %3109 = vtanh.f32 %v2000_v2  ;;  %v2219_v2 = vpop.permute.xlu1 %2218 }
 0x205   :  { %v2095_v41 = vadd.f32 0.5, %v2063_v39  ;;  %v1730_v42 = vpop.f32.mrf.mxu2  ;;  %3111 = vtanh.f32 %v3696_v53 }
 0x206   :  { %v1731_v4 = vadd.f32 %v1730_v42, %v1562_v22  ;;  %v1899_v33 = vpop.f32.mrf.mxu3  ;;  %v1395_v19 = vpop.f32.mrf.mxu0 }
 0x207   :  { %v2127_v55 = vmul.f32 %v3108_v24, %v2095_v41  ;;  %v1396_v36 = vadd.f32 %v1395_v19, %v3873_v0  ;;  %v1564_v47 = vpop.f32.mrf.mxu1  ;;  %v2905_v41 = vld [vmem:[#allocation3 + $0x3b0] sm:$0xf0]  ;;  %v2911_v24 = vld [vmem:[#allocation3 + $0x3a8] sm:$0xf] }
 0x208   :  { %v1900_v23 = vadd.f32 %v1899_v33, %v1731_v4  ;;  %v3068_v4 = vld [vmem:[#allocation3 + $0x3b4] sm:$0xf0]  ;;  %v3066_v33 = vld [vmem:[#allocation3 + $0x3ac] sm:$0xf] }
 0x209   :  { %v2351_v1 = vmul.f32 %v2214_v30, %v2127_v55  ;;  %v1565_v45 = vadd.f32 %v1564_v47, %v1396_v36  ;;  %1434 = vmatmul.bf16.gmra.mxu0 %v2888_v40  ;;  %1603 = vmatmul.bf16.gmra.mxu1 %v2892_v3  ;;  %v2912_v30 = vor.u32 %v3068_v4, %v2911_v24  ;;  %v2921_v24 = vld [vmem:[#allocation3 + $0x3d0] sm:$0xf0] }
 0x20a   :  { %v3110_v6 = vpop.eup %3109  ;;  %v2001_v15 = vmul.f32 0.5, %v1900_v23  ;;  %1772 = vmatmul.bf16.gmra.mxu2 %v2896_v50 }
 0x20b   :  { %v2382_v8 = vadd.f32 %v2381_v61, %v2351_v1  ;;  %v2064_v63 = vmul.f32 0.5, %v3110_v6  ;;  %1941 = vmatmul.bf16.gmra.mxu3 %v2900_v37  ;;  %v3112_v0 = vpop.eup %3111  ;;  %v2903_v61 = vld [vmem:[#allocation3 + $0x3a0] sm:$0xf]  ;;  %v2908_v37 = vor.u32 %v3065_v52, %v2905_v41  ;;  %v3071_v52 = vld [vmem:[#allocation3 + $0x3cc] sm:$0xf0] }
 0x20c   :  { %3113 = vtanh.f32 %v2001_v15  ;;  %v2224_v15 = vpop.permute.xlu2 %2223 }
 0x20d   :  { %v2096_v17 = vadd.f32 0.5, %v2064_v63  ;;  %v1733_v25 = vpop.f32.mrf.mxu2  ;;  %3115 = vtanh.f32 %v3707_v16  ;;  %v2904_v16 = vor.u32 %v3067_v18, %v2903_v61 }
 0x20e   :  { %v1734_v31 = vadd.f32 %v1733_v25, %v1565_v45  ;;  %v1902_v22 = vpop.f32.mrf.mxu3  ;;  %v1397_v29 = vpop.f32.mrf.mxu0 }
 0x20f   :  { %v2128_v53 = vmul.f32 %v3112_v0, %v2096_v17  ;;  %v1398_v7 = vadd.f32 %v1397_v29, %v3875_v10  ;;  %v1566_v49 = vpop.f32.mrf.mxu1  ;;  %v2913_v10 = vld [vmem:[#allocation3 + $0x3b8] sm:$0xf0] }
 0x210   :  { %v1903_v11 = vadd.f32 %v1902_v22, %v1734_v31  ;;  %v2916_v6 = vor.u32 %v3066_v33, %v2913_v10  ;;  %v2927_v10 = vld [vmem:[#allocation3 + $0x3c8] sm:$0xf] }
 0x211   :  { %v2352_v32 = vmul.f32 %v2219_v2, %v2128_v53  ;;  %v1567_v39 = vadd.f32 %v1566_v49, %v1398_v7 }
 0x212   :  { %v3114_v43 = vpop.eup %3113  ;;  %v2002_v21 = vmul.f32 0.5, %v1903_v11 }
 0x213   :  { %v2383_v42 = vadd.f32 %v2382_v8, %v2352_v32  ;;  %v2065_v40 = vmul.f32 0.5, %v3114_v43  ;;  %v3116_v50 = vpop.eup %3115 }
 0x214   :  { %3117 = vtanh.f32 %v2002_v21  ;;  %v2919_v21 = vld [vmem:[#allocation3 + $0x3c0] sm:$0xf] }
 0x215   :  { %v2097_v19 = vadd.f32 0.5, %v2065_v40  ;;  %v1735_v3 = vpop.f32.mrf.mxu2  ;;  %3119 = vtanh.f32 %v3718_v28  ;;  %v3069_v40 = vld [vmem:[#allocation3 + $0x3c4] sm:$0xf] }
 0x216   :  { %v1736_v55 = vadd.f32 %v1735_v3, %v1567_v39  ;;  %v1904_v36 = vpop.f32.mrf.mxu3  ;;  %v1400_v47 = vpop.f32.mrf.mxu0  ;;  %v3070_v3 = vld [vmem:[#allocation3 + $0x3cc] sm:$0xf] }
 0x217   :  { %v2129_v23 = vmul.f32 %v3116_v50, %v2097_v19  ;;  %v1401_v1 = vadd.f32 %v1400_v47, %v3880_v59  ;;  %v1569_v45 = vpop.f32.mrf.mxu1  ;;  %v2229_v39 = vpop.permute.xlu0 %2228  ;;  %v3072_v19 = vld [vmem:[#allocation3 + $0x3d4] sm:$0xf0] }
 0x218   :  { %v1905_v8 = vadd.f32 %v1904_v36, %v1736_v55 }
 0x219   :  { %v2353_v63 = vmul.f32 %v2224_v15, %v2129_v23  ;;  %v1570_v17 = vadd.f32 %v1569_v45, %v1401_v1  ;;  %1439 = vmatmul.bf16.gmra.mxu0 %v2904_v16  ;;  %1608 = vmatmul.bf16.gmra.mxu1 %v2908_v37  ;;  %v2928_v23 = vor.u32 %v3072_v19, %v2927_v10  ;;  %v3076_v10 = vld [vmem:[#allocation3 + $0x3f4] sm:$0xf0]  ;;  %v3074_v19 = vld [vmem:[#allocation3 + $0x3ec] sm:$0xf] }
 0x21a   :  { %v3118_v25 = vpop.eup %3117  ;;  %v2003_v0 = vmul.f32 0.5, %v1905_v8  ;;  %1777 = vmatmul.bf16.gmra.mxu2 %v2912_v30  ;;  %v2924_v30 = vor.u32 %v3069_v40, %v2921_v24  ;;  %v2234_v8 = vpop.permute.xlu1 %2233  ;;  %v2937_v40 = vld [vmem:[#allocation3 + $0x3f0] sm:$0xf0] }
 0x21b   :  { %v2384_v31 = vadd.f32 %v2383_v42, %v2353_v63  ;;  %v2066_v22 = vmul.f32 0.5, %v3118_v25  ;;  %1946 = vmatmul.bf16.gmra.mxu3 %v2916_v6  ;;  %v3120_v59 = vpop.eup %3119 }
 0x21c   :  { %3121 = vtanh.f32 %v2003_v0 }
 0x21d   :  { %v2098_v29 = vadd.f32 0.5, %v2066_v22  ;;  %v1738_v53 = vpop.f32.mrf.mxu2  ;;  %3123 = vtanh.f32 %v3729_v56  ;;  %v2920_v56 = vor.u32 %v3071_v52, %v2919_v21  ;;  %v3075_v21 = vld [vmem:[#allocation3 + $0x3ec] sm:$0xf0] }
 0x21e   :  { %v1739_v7 = vadd.f32 %v1738_v53, %v1570_v17  ;;  %v1907_v49 = vpop.f32.mrf.mxu3  ;;  %v1402_v2 = vpop.f32.mrf.mxu0 }
 0x21f   :  { %v2130_v28 = vmul.f32 %v3120_v59, %v2098_v29  ;;  %v1403_v11 = vadd.f32 %v1402_v2, %v3882_v51  ;;  %v1571_v32 = vpop.f32.mrf.mxu1  ;;  %v2929_v51 = vld [vmem:[#allocation3 + $0x3d8] sm:$0xf0] }
 0x220   :  { %v1908_v61 = vadd.f32 %v1907_v49, %v1739_v7  ;;  %v2932_v15 = vor.u32 %v3070_v3, %v2929_v51 }
 0x221   :  { %v2354_v18 = vmul.f32 %v2229_v39, %v2130_v28  ;;  %v1572_v43 = vadd.f32 %v1571_v32, %v1403_v11  ;;  %v2239_v32 = vpop.permute.xlu2 %2238 }
 0x222   :  { %v3122_v41 = vpop.eup %3121  ;;  %v2004_v42 = vmul.f32 0.5, %v1908_v61 }
 0x223   :  { %v2385_v4 = vadd.f32 %v2384_v31, %v2354_v18  ;;  %v2067_v33 = vmul.f32 0.5, %v3122_v41  ;;  %v3124_v55 = vpop.eup %3123 }
 0x224   :  { %3125 = vtanh.f32 %v2004_v42  ;;  %v3073_v42 = vld [vmem:[#allocation3 + $0x3e4] sm:$0xf] }
 0x225   :  { %v2099_v16 = vadd.f32 0.5, %v2067_v33  ;;  %v1740_v50 = vpop.f32.mrf.mxu2  ;;  %3127 = vtanh.f32 %v3740_v5  ;;  %v2943_v33 = vld [vmem:[#allocation3 + $0x3e8] sm:$0xf] }
 0x226   :  { %v1741_v36 = vadd.f32 %v1740_v50, %v1572_v43  ;;  %v1909_v47 = vpop.f32.mrf.mxu3  ;;  %v1405_v37 = vpop.f32.mrf.mxu0  ;;  %v2935_v43 = vld [vmem:[#allocation3 + $0x3e0] sm:$0xf] }
 0x227   :  { %v2131_v1 = vmul.f32 %v3124_v55, %v2099_v16  ;;  %v1406_v45 = vadd.f32 %v1405_v37, %v3887_v57  ;;  %v1574_v6 = vpop.f32.mrf.mxu1 }
 0x228   :  { %v1910_v63 = vadd.f32 %v1909_v47, %v1741_v36  ;;  %v2940_v36 = vor.u32 %v3073_v42, %v2937_v40  ;;  %v2944_v47 = vor.u32 %v3076_v10, %v2943_v33 }
 0x229   :  { %v2355_v17 = vmul.f32 %v2234_v8, %v2131_v1  ;;  %v1575_v25 = vadd.f32 %v1574_v6, %v1406_v45  ;;  %1444 = vmatmul.bf16.gmra.mxu0 %v2920_v56  ;;  %1613 = vmatmul.bf16.gmra.mxu1 %v2924_v30  ;;  %v2244_v45 = vpop.permute.xlu0 %2243 }
 0x22a   :  { %v3126_v0 = vpop.eup %3125  ;;  %v2005_v31 = vmul.f32 0.5, %v1910_v63  ;;  %1782 = vmatmul.bf16.gmra.mxu2 %v2928_v23 }
 0x22b   :  { %v2386_v22 = vadd.f32 %v2385_v4, %v2355_v17  ;;  %v2068_v29 = vmul.f32 0.5, %v3126_v0  ;;  %1951 = vmatmul.bf16.gmra.mxu3 %v2932_v15  ;;  %v3128_v57 = vpop.eup %3127 }
 0x22c   :  { %3129 = vtanh.f32 %v2005_v31 }
 0x22d   :  { %v2100_v53 = vadd.f32 0.5, %v2068_v29  ;;  %v1743_v59 = vpop.f32.mrf.mxu2  ;;  %3131 = vtanh.f32 %v3751_v34  ;;  %v2936_v34 = vor.u32 %v3075_v21, %v2935_v43 }
 0x22e   :  { %v1744_v7 = vadd.f32 %v1743_v59, %v1575_v25  ;;  %v1912_v49 = vpop.f32.mrf.mxu3  ;;  %v1407_v2 = vpop.f32.mrf.mxu0 }
 0x22f   :  { %v2132_v5 = vmul.f32 %v3128_v57, %v2100_v53  ;;  %v1408_v28 = vadd.f32 %v1407_v2, %v3890_v54  ;;  %v1576_v11 = vpop.f32.mrf.mxu1  ;;  %v2945_v54 = vld [vmem:[#allocation3 + $0x3f8] sm:$0xf0] }
 0x230   :  { %v1913_v39 = vadd.f32 %v1912_v49, %v1744_v7  ;;  %v2948_v1 = vor.u32 %v3074_v19, %v2945_v54  ;;  %v2249_v49 = vpop.permute.xlu1 %2248 }
 0x231   :  { %v2356_v61 = vmul.f32 %v2239_v32, %v2132_v5  ;;  %v1577_v18 = vadd.f32 %v1576_v11, %v1408_v28 }
 0x232   :  { %v3130_v52 = vpop.eup %3129  ;;  %v2006_v41 = vmul.f32 0.5, %v1913_v39 }
 0x233   :  { %v2387_v24 = vadd.f32 %v2386_v22, %v2356_v61  ;;  %v2069_v4 = vmul.f32 0.5, %v3130_v52  ;;  %v3132_v16 = vpop.eup %3131 }
 0x234   :  { %3133 = vtanh.f32 %v2006_v41 }
 0x235   :  { %v2101_v3 = vadd.f32 0.5, %v2069_v4  ;;  %v1745_v51 = vpop.f32.mrf.mxu2  ;;  %3135 = vtanh.f32 %v3762_v48 }
 0x236   :  { %v1746_v50 = vadd.f32 %v1745_v51, %v1577_v18  ;;  %v1914_v56 = vpop.f32.mrf.mxu3  ;;  %v1410_v55 = vpop.f32.mrf.mxu0 }
 0x237   :  { %v2133_v37 = vmul.f32 %v3132_v16, %v2101_v3  ;;  %v1411_v30 = vadd.f32 %v1410_v55, %v3894_v26  ;;  %v1579_v23 = vpop.f32.mrf.mxu1 }
 0x238   :  { %v1915_v6 = vadd.f32 %v1914_v56, %v1746_v50 }
 0x239   :  { %v2357_v15 = vmul.f32 %v2244_v45, %v2133_v37  ;;  %v1580_v8 = vadd.f32 %v1579_v23, %v1411_v30  ;;  %1449 = vmatmul.bf16.gmra.mxu0 %v2936_v34  ;;  %1618 = vmatmul.bf16.gmra.mxu1 %v2940_v36 }
 0x23a   :  { %v3134_v63 = vpop.eup %3133  ;;  %v2007_v17 = vmul.f32 0.5, %v1915_v6  ;;  %1787 = vmatmul.bf16.gmra.mxu2 %v2944_v47 }
 0x23b   :  { %v2388_v25 = vadd.f32 %v2387_v24, %v2357_v15  ;;  %v2070_v0 = vmul.f32 0.5, %v3134_v63  ;;  %1956 = vmatmul.bf16.gmra.mxu3 %v2948_v1  ;;  %v3136_v26 = vpop.eup %3135 }
 0x23c   :  { %3137 = vtanh.f32 %v2007_v17 }
 0x23d   :  { %v2102_v31 = vadd.f32 0.5, %v2070_v0  ;;  %v1748_v22 = vpop.f32.mrf.mxu2  ;;  %3139 = vtanh.f32 %v3773_v13  ;;  %v2254_v13 = vpop.permute.xlu2 %2253 }
 0x23e   :  { %v1749_v29 = vadd.f32 %v1748_v22, %v1580_v8  ;;  %v1917_v53 = vpop.f32.mrf.mxu3  ;;  %v1412_v59 = vpop.f32.mrf.mxu0 }
 0x23f   :  { %v2134_v48 = vmul.f32 %v3136_v26, %v2102_v31  ;;  %v1413_v57 = vadd.f32 %v1412_v59, %v3896_v62  ;;  %v1581_v7 = vpop.f32.mrf.mxu1 }
 0x240   :  { %v1918_v2 = vadd.f32 %v1917_v53, %v1749_v29 }
 0x241   :  { %v2358_v5 = vmul.f32 %v2249_v49, %v2134_v48  ;;  %v1582_v28 = vadd.f32 %v1581_v7, %v1413_v57 }
 0x242   :  { %v3138_v11 = vpop.eup %3137  ;;  %v2008_v32 = vmul.f32 0.5, %v1918_v2 }
 0x243   :  { %v2389_v39 = vadd.f32 %v2388_v25, %v2358_v5  ;;  %v2071_v61 = vmul.f32 0.5, %v3138_v11  ;;  %v3140_v21 = vpop.eup %3139 }
 0x244   :  { %3141 = vtanh.f32 %v2008_v32 }
 0x245   :  { %v2103_v18 = vadd.f32 0.5, %v2071_v61  ;;  %v1750_v43 = vpop.f32.mrf.mxu2  ;;  %3143 = vtanh.f32 %v3784_v27  ;;  %v2259_v27 = vpop.permute.xlu0 %2258 }
 0x246   :  { %v1751_v52 = vadd.f32 %v1750_v43, %v1582_v28  ;;  %v1919_v41 = vpop.f32.mrf.mxu3  ;;  %v1415_v42 = vpop.f32.mrf.mxu0 }
 0x247   :  { %v2135_v40 = vmul.f32 %v3140_v21, %v2103_v18  ;;  %v1416_v62 = vadd.f32 %v1415_v42, %v3901_v38  ;;  %v1584_v24 = vpop.f32.mrf.mxu1 }
 0x248   :  { %v1920_v4 = vadd.f32 %v1919_v41, %v1751_v52 }
 0x249   :  { %v2359_v33 = vmul.f32 %v2254_v13, %v2135_v40  ;;  %v1585_v10 = vadd.f32 %v1584_v24, %v1416_v62 }
 0x24a   :  { %v3142_v19 = vpop.eup %3141  ;;  %v2009_v54 = vmul.f32 0.5, %v1920_v4 }
 0x24b   :  { %v2390_v3 = vadd.f32 %v2389_v39, %v2359_v33  ;;  %v2072_v51 = vmul.f32 0.5, %v3142_v19  ;;  %v3144_v50 = vpop.eup %3143 }
 0x24c   :  { %3145 = vtanh.f32 %v2009_v54 }
 0x24d   :  { %v2104_v34 = vadd.f32 0.5, %v2072_v51  ;;  %v1753_v16 = vpop.f32.mrf.mxu2  ;;  %3147 = vtanh.f32 %v3795_v60  ;;  %v2264_v60 = vpop.permute.xlu1 %2263 }
 0x24e   :  { %v1754_v56 = vadd.f32 %v1753_v16, %v1585_v10  ;;  %v1922_v55 = vpop.f32.mrf.mxu3  ;;  %v1417_v36 = vpop.f32.mrf.mxu0 }
 0x24f   :  { %v2136_v47 = vmul.f32 %v3144_v50, %v2104_v34  ;;  %v1418_v38 = vadd.f32 %v1417_v36, %v3903_v35  ;;  %v1586_v37 = vpop.f32.mrf.mxu1 }
 0x250   :  { %v1923_v30 = vadd.f32 %v1922_v55, %v1754_v56 }
 0x251   :  { %v2360_v23 = vmul.f32 %v2259_v27, %v2136_v47  ;;  %v1587_v1 = vadd.f32 %v1586_v37, %v1418_v38 }
 0x252   :  { %v3146_v45 = vpop.eup %3145  ;;  %v2010_v6 = vmul.f32 0.5, %v1923_v30 }
 0x253   :  { %v2391_v15 = vadd.f32 %v2390_v3, %v2360_v23  ;;  %v2073_v8 = vmul.f32 0.5, %v3146_v45  ;;  %v3148_v25 = vpop.eup %3147 }
 0x254   :  { %3149 = vtanh.f32 %v2010_v6  ;;  %v4040_v6 = vld [vmem:[#allocation9_spill] sm:$0xff] }
 0x255   :  { %v2105_v63 = vadd.f32 0.5, %v2073_v8  ;;  %v1755_v17 = vpop.f32.mrf.mxu2  ;;  %3151 = vtanh.f32 %v3806_v12  ;;  %v2269_v12 = vpop.permute.xlu2 %2268  ;;  %v4041_v8 = vld [vmem:[#allocation20_spill] sm:$0xff] }
 0x256   :  { %v1756_v0 = vadd.f32 %v1755_v17, %v1587_v1  ;;  %v1924_v31 = vpop.f32.mrf.mxu3  ;;  %v1420_v22 = vpop.f32.mrf.mxu0 }
 0x257   :  { %v2137_v26 = vmul.f32 %v3148_v25, %v2105_v63  ;;  %v1421_v35 = vadd.f32 %v1420_v22, %v3905_v14  ;;  %v1589_v29 = vpop.f32.mrf.mxu1 }
 0x258   :  { %v1925_v53 = vadd.f32 %v1924_v31, %v1756_v0 }
 0x259   :  { %v2361_v59 = vmul.f32 %v2264_v60, %v2137_v26  ;;  %v1590_v48 = vadd.f32 %v1589_v29, %v1421_v35 }
 0x25a   :  { %v3150_v57 = vpop.eup %3149  ;;  %v2011_v7 = vmul.f32 0.5, %v1925_v53 }
 0x25b   :  { %v2392_v49 = vadd.f32 %v2391_v15, %v2361_v59  ;;  %v2074_v2 = vmul.f32 0.5, %v3150_v57  ;;  %v3152_v11 = vpop.eup %3151 }
 0x25c   :  { %3153 = vtanh.f32 %v2011_v7 }
 0x25d   :  { %v2106_v5 = vadd.f32 0.5, %v2074_v2  ;;  %v1758_v28 = vpop.f32.mrf.mxu2  ;;  %3155 = vtanh.f32 %v3811_v44  ;;  %v2274_v44 = vpop.permute.xlu0 %2273 }
 0x25e   :  { %v1759_v32 = vadd.f32 %v1758_v28, %v1590_v48  ;;  %v1927_v39 = vpop.f32.mrf.mxu3  ;;  %v1422_v61 = vpop.f32.mrf.mxu0 }
 0x25f   :  { %v2138_v18 = vmul.f32 %v3152_v11, %v2106_v5  ;;  %v1423_v14 = vadd.f32 %v1422_v61, %v3910_v20  ;;  %v1591_v43 = vpop.f32.mrf.mxu1  ;;  %v2284_v2 = vpop.permute.xlu2 %2283 }
 0x260   :  { %v1928_v21 = vadd.f32 %v1927_v39, %v1759_v32 }
 0x261   :  { %v2362_v52 = vmul.f32 %v2269_v12, %v2138_v18  ;;  %v1592_v41 = vadd.f32 %v1591_v43, %v1423_v14 }
 0x262   :  { %v3154_v42 = vpop.eup %3153  ;;  %v2012_v40 = vmul.f32 0.5, %v1928_v21 }
 0x263   :  { %v2393_v62 = vadd.f32 %v2392_v49, %v2362_v52  ;;  %v2075_v24 = vmul.f32 0.5, %v3154_v42  ;;  %v3156_v33 = vpop.eup %3155  ;;  %v4042_v49 = vld [vmem:[#allocation10_spill] sm:$0xff] }
 0x264   :  { %3157 = vtanh.f32 %v2012_v40 }
 0x265   :  { %v2107_v13 = vadd.f32 0.5, %v2075_v24  ;;  %v1760_v4 = vpop.f32.mrf.mxu2  ;;  %3159 = vtanh.f32 %v3820_v58  ;;  %v2279_v58 = vpop.permute.xlu1 %2278  ;;  %v4043_v24 = vld [vmem:[#allocation11_spill] sm:$0xff] }
 0x266   :  { %v1761_v10 = vadd.f32 %v1760_v4, %v1592_v41  ;;  %v1929_v19 = vpop.f32.mrf.mxu3  ;;  %v1425_v54 = vpop.f32.mrf.mxu0 }
 0x267   :  { %v2139_v3 = vmul.f32 %v3156_v33, %v2107_v13  ;;  %v1426_v20 = vadd.f32 %v1425_v54, %v3912_v46  ;;  %v1594_v51 = vpop.f32.mrf.mxu1  ;;  %v2289_v13 = vpop.permute.xlu0 %2288 }
 0x268   :  { %v1930_v34 = vadd.f32 %v1929_v19, %v1761_v10 }
 0x269   :  { %v2363_v16 = vmul.f32 %v2274_v44, %v2139_v3  ;;  %v1595_v50 = vadd.f32 %v1594_v51, %v1426_v20 }
 0x26a   :  { %v3158_v56 = vpop.eup %3157  ;;  %v2013_v55 = vmul.f32 0.5, %v1930_v34 }
 0x26b   :  { %v2394_v36 = vadd.f32 %v2393_v62, %v2363_v16  ;;  %v2076_v47 = vmul.f32 0.5, %v3158_v56  ;;  %v3160_v27 = vpop.eup %3159 }
 0x26c   :  { %3161 = vtanh.f32 %v2013_v55 }
 0x26d   :  { %v2108_v38 = vadd.f32 0.5, %v2076_v47  ;;  %v1763_v37 = vpop.f32.mrf.mxu2  ;;  %3163 = vtanh.f32 %v4040_v6 }
 0x26e   :  { %v1764_v30 = vadd.f32 %v1763_v37, %v1595_v50  ;;  %v1932_v23 = vpop.f32.mrf.mxu3  ;;  %v1427_v1 = vpop.f32.mrf.mxu0 }
 0x26f   :  { %v2140_v45 = vmul.f32 %v3160_v27, %v2108_v38  ;;  %v1596_v46 = vpop.f32.mrf.mxu1  ;;  %v1428_v63 = vadd.f32 %v1427_v1, %v4041_v8  ;;  %v4045_v38 = vld [vmem:[#allocation12_spill] sm:$0xff]  ;;  %v2294_v37 = vpop.permute.xlu1 %2293 }
 0x270   :  { %v1933_v15 = vadd.f32 %v1932_v23, %v1764_v30  ;;  %v4046_v30 = vld [vmem:[#allocation24_spill] sm:$0xff] }
 0x271   :  { %v2364_v17 = vmul.f32 %v2279_v58, %v2140_v45  ;;  %v1597_v26 = vadd.f32 %v1596_v46, %v1428_v63 }
 0x272   :  { %v3162_v25 = vpop.eup %3161  ;;  %v2014_v0 = vmul.f32 0.5, %v1933_v15 }
 0x273   :  { %v2395_v31 = vadd.f32 %v2394_v36, %v2364_v17  ;;  %v2077_v22 = vmul.f32 0.5, %v3162_v25  ;;  %v3164_v60 = vpop.eup %3163 }
 0x274   :  { %3165 = vtanh.f32 %v2014_v0 }
 0x275   :  { %v2109_v35 = vadd.f32 0.5, %v2077_v22  ;;  %v1765_v29 = vpop.f32.mrf.mxu2  ;;  %3167 = vtanh.f32 %v4042_v49 }
 0x276   :  { %v1766_v53 = vadd.f32 %v1765_v29, %v1597_v26  ;;  %v1934_v59 = vpop.f32.mrf.mxu3  ;;  %v1430_v48 = vpop.f32.mrf.mxu0 }
 0x277   :  { %v2141_v57 = vmul.f32 %v3164_v60, %v2109_v35  ;;  %v1599_v7 = vpop.f32.mrf.mxu1  ;;  %v1431_v28 = vadd.f32 %v1430_v48, %v3919_v9  ;;  %v4044_v9 = vld [vmem:[#allocation22_spill] sm:$0xff]  ;;  %v4047_v35 = vld [vmem:[#allocation13_spill] sm:$0xff]  ;;  %v2299_v29 = vpop.permute.xlu2 %2298 }
 0x278   :  { %v1935_v5 = vadd.f32 %v1934_v59, %v1766_v53  ;;  %v4048_v53 = vld [vmem:[#allocation25_spill] sm:$0xff] }
 0x279   :  { %v2365_v11 = vmul.f32 %v2284_v2, %v2141_v57  ;;  %v1600_v14 = vadd.f32 %v1599_v7, %v1431_v28 }
 0x27a   :  { %v3166_v32 = vpop.eup %3165  ;;  %v2015_v39 = vmul.f32 0.5, %v1935_v5 }
 0x27b   :  { %v2396_v61 = vadd.f32 %v2395_v31, %v2365_v11  ;;  %v2078_v18 = vmul.f32 0.5, %v3166_v32  ;;  %v3168_v21 = vpop.eup %3167 }
 0x27c   :  { %3169 = vtanh.f32 %v2015_v39 }
 0x27d   :  { %v2110_v43 = vadd.f32 0.5, %v2078_v18  ;;  %v1768_v12 = vpop.f32.mrf.mxu2  ;;  %3171 = vtanh.f32 %v4043_v24 }
 0x27e   :  { %v1769_v52 = vadd.f32 %v1768_v12, %v1600_v14  ;;  %v1937_v41 = vpop.f32.mrf.mxu3  ;;  %v1432_v42 = vpop.f32.mrf.mxu0  ;;  %v4049_v12 = vld [vmem:[#allocation14_spill] sm:$0xff] }
 0x27f   :  { %v2142_v40 = vmul.f32 %v3168_v21, %v2110_v43  ;;  %v1601_v62 = vpop.f32.mrf.mxu1  ;;  %v1433_v33 = vadd.f32 %v1432_v42, %v4044_v9  ;;  %v2304_v21 = vpop.permute.xlu0 %2303 }
 0x280   :  { %v1938_v4 = vadd.f32 %v1937_v41, %v1769_v52  ;;  %v4050_v41 = vld [vmem:[#allocation26_spill] sm:$0xff] }
 0x281   :  { %v2366_v10 = vmul.f32 %v2289_v13, %v2142_v40  ;;  %v1602_v51 = vadd.f32 %v1601_v62, %v1433_v33 }
 0x282   :  { %v3170_v19 = vpop.eup %3169  ;;  %v2016_v54 = vmul.f32 0.5, %v1938_v4 }
 0x283   :  { %v2397_v3 = vadd.f32 %v2396_v61, %v2366_v10  ;;  %v2079_v20 = vmul.f32 0.5, %v3170_v19  ;;  %v3172_v16 = vpop.eup %3171 }
 0x284   :  { %3173 = vtanh.f32 %v2016_v54 }
 0x285   :  { %v2111_v44 = vadd.f32 0.5, %v2079_v20  ;;  %v1770_v34 = vpop.f32.mrf.mxu2  ;;  %3175 = vtanh.f32 %v4045_v38 }
 0x286   :  { %v1771_v50 = vadd.f32 %v1770_v34, %v1602_v51  ;;  %v1939_v56 = vpop.f32.mrf.mxu3  ;;  %v1435_v55 = vpop.f32.mrf.mxu0  ;;  %v4051_v34 = vld [vmem:[#allocation15_spill] sm:$0xff] }
 0x287   :  { %v2143_v36 = vmul.f32 %v3172_v16, %v2111_v44  ;;  %v1604_v47 = vpop.f32.mrf.mxu1  ;;  %v1436_v23 = vadd.f32 %v1435_v55, %v4046_v30  ;;  %v2309_v16 = vpop.permute.xlu1 %2308 }
 0x288   :  { %v1940_v27 = vadd.f32 %v1939_v56, %v1771_v50  ;;  %v4052_v56 = vld [vmem:[#allocation27_spill] sm:$0xff] }
 0x289   :  { %v2367_v1 = vmul.f32 %v2294_v37, %v2143_v36  ;;  %v1605_v15 = vadd.f32 %v1604_v47, %v1436_v23 }
 0x28a   :  { %v3174_v45 = vpop.eup %3173  ;;  %v2017_v46 = vmul.f32 0.5, %v1940_v27 }
 0x28b   :  { %v2398_v6 = vadd.f32 %v2397_v3, %v2367_v1  ;;  %v2080_v58 = vmul.f32 0.5, %v3174_v45  ;;  %v3176_v17 = vpop.eup %3175 }
 0x28c   :  { %3177 = vtanh.f32 %v2017_v46 }
 0x28d   :  { %v2112_v8 = vadd.f32 0.5, %v2080_v58  ;;  %v1773_v63 = vpop.f32.mrf.mxu2  ;;  %3179 = vtanh.f32 %v4047_v35 }
 0x28e   :  { %v1774_v25 = vadd.f32 %v1773_v63, %v1605_v15  ;;  %v1942_v0 = vpop.f32.mrf.mxu3  ;;  %v1437_v31 = vpop.f32.mrf.mxu0  ;;  %v4053_v63 = vld [vmem:[#allocation16_spill] sm:$0xff] }
 0x28f   :  { %v2144_v22 = vmul.f32 %v3176_v17, %v2112_v8  ;;  %v1606_v26 = vpop.f32.mrf.mxu1  ;;  %v1438_v59 = vadd.f32 %v1437_v31, %v4048_v53  ;;  %v2314_v17 = vpop.permute.xlu2 %2313 }
 0x290   :  { %v1943_v60 = vadd.f32 %v1942_v0, %v1774_v25  ;;  %v4054_v0 = vld [vmem:[#allocation28_spill] sm:$0xff] }
 0x291   :  { %v2368_v48 = vmul.f32 %v2299_v29, %v2144_v22  ;;  %v1607_v5 = vadd.f32 %v1606_v26, %v1438_v59 }
 0x292   :  { %v3178_v57 = vpop.eup %3177  ;;  %v2018_v7 = vmul.f32 0.5, %v1943_v60 }
 0x293   :  { %v2399_v49 = vadd.f32 %v2398_v6, %v2368_v48  ;;  %v2081_v2 = vmul.f32 0.5, %v3178_v57  ;;  %v3180_v32 = vpop.eup %3179 }
 0x294   :  { %3181 = vtanh.f32 %v2018_v7 }
 0x295   :  { %v2113_v28 = vadd.f32 0.5, %v2081_v2  ;;  %v1775_v11 = vpop.f32.mrf.mxu2  ;;  %3183 = vtanh.f32 %v4049_v12 }
 0x296   :  { %v1776_v39 = vadd.f32 %v1775_v11, %v1607_v5  ;;  %v1944_v61 = vpop.f32.mrf.mxu3  ;;  %v1440_v18 = vpop.f32.mrf.mxu0  ;;  %v4055_v11 = vld [vmem:[#allocation17_spill] sm:$0xff] }
 0x297   :  { %v2145_v14 = vmul.f32 %v3180_v32, %v2113_v28  ;;  %v1609_v43 = vpop.f32.mrf.mxu1  ;;  %v1441_v42 = vadd.f32 %v1440_v18, %v4050_v41  ;;  %v2319_v32 = vpop.permute.xlu0 %2318 }
 0x298   :  { %v1945_v52 = vadd.f32 %v1944_v61, %v1776_v39  ;;  %v4056_v61 = vld [vmem:[#allocation29_spill] sm:$0xff] }
 0x299   :  { %v2369_v40 = vmul.f32 %v2304_v21, %v2145_v14  ;;  %v1610_v9 = vadd.f32 %v1609_v43, %v1441_v42 }
 0x29a   :  { %v3182_v62 = vpop.eup %3181  ;;  %v2019_v24 = vmul.f32 0.5, %v1945_v52 }
 0x29b   :  { %v2400_v13 = vadd.f32 %v2399_v49, %v2369_v40  ;;  %v2082_v4 = vmul.f32 0.5, %v3182_v62  ;;  %v3184_v19 = vpop.eup %3183 }
 0x29c   :  { %3185 = vtanh.f32 %v2019_v24 }
 0x29d   :  { %v2114_v33 = vadd.f32 0.5, %v2082_v4  ;;  %v1778_v10 = vpop.f32.mrf.mxu2  ;;  %3187 = vtanh.f32 %v4051_v34 }
 0x29e   :  { %v1779_v54 = vadd.f32 %v1778_v10, %v1610_v9  ;;  %v1947_v3 = vpop.f32.mrf.mxu3  ;;  %v1442_v20 = vpop.f32.mrf.mxu0 }
 0x29f   :  { %v2146_v51 = vmul.f32 %v3184_v19, %v2114_v33  ;;  %v1611_v44 = vpop.f32.mrf.mxu1  ;;  %v1443_v55 = vadd.f32 %v1442_v20, %v4052_v56  ;;  %v4057_v33 = vld [vmem:[#allocation18_spill] sm:$0xff]  ;;  %v2324_v10 = vpop.permute.xlu1 %2323 }
 0x2a0   :  { %v1948_v50 = vadd.f32 %v1947_v3, %v1779_v54  ;;  %v4058_v54 = vld [vmem:[#allocation30_spill] sm:$0xff] }
 0x2a1   :  { %v2370_v36 = vmul.f32 %v2309_v16, %v2146_v51  ;;  %v1612_v30 = vadd.f32 %v1611_v44, %v1443_v55 }
 0x2a2   :  { %v3186_v47 = vpop.eup %3185  ;;  %v2020_v38 = vmul.f32 0.5, %v1948_v50 }
 0x2a3   :  { %v2401_v37 = vadd.f32 %v2400_v13, %v2370_v36  ;;  %v2083_v27 = vmul.f32 0.5, %v3186_v47  ;;  %v3188_v45 = vpop.eup %3187 }
 0x2a4   :  { %3189 = vtanh.f32 %v2020_v38 }
 0x2a5   :  { %v2115_v23 = vadd.f32 0.5, %v2083_v27  ;;  %v1780_v1 = vpop.f32.mrf.mxu2  ;;  %3191 = vtanh.f32 %v4053_v63 }
 0x2a6   :  { %v1781_v46 = vadd.f32 %v1780_v1, %v1612_v30  ;;  %v1949_v6 = vpop.f32.mrf.mxu3  ;;  %v1445_v58 = vpop.f32.mrf.mxu0 }
 0x2a7   :  { %v2147_v15 = vmul.f32 %v3188_v45, %v2115_v23  ;;  %v1614_v8 = vpop.f32.mrf.mxu1  ;;  %v1446_v31 = vadd.f32 %v1445_v58, %v4054_v0  ;;  %v4059_v23 = vld [vmem:[#allocation19_spill] sm:$0xff]  ;;  %v2329_v1 = vpop.permute.xlu2 %2328 }
 0x2a8   :  { %v1950_v25 = vadd.f32 %v1949_v6, %v1781_v46  ;;  %v4060_v46 = vld [vmem:[#allocation31_spill] sm:$0xff] }
 0x2a9   :  { %v2371_v22 = vmul.f32 %v2314_v17, %v2147_v15  ;;  %v1615_v53 = vadd.f32 %v1614_v8, %v1446_v31 }
 0x2aa   :  { %v3190_v26 = vpop.eup %3189  ;;  %v2021_v35 = vmul.f32 0.5, %v1950_v25 }
 0x2ab   :  { %v2402_v29 = vadd.f32 %v2401_v37, %v2371_v22  ;;  %v2084_v60 = vmul.f32 0.5, %v3190_v26  ;;  %v3192_v57 = vpop.eup %3191 }
 0x2ac   :  { %3193 = vtanh.f32 %v2021_v35 }
 0x2ad   :  { %v2116_v59 = vadd.f32 0.5, %v2084_v60  ;;  %v1783_v48 = vpop.f32.mrf.mxu2  ;;  %3195 = vtanh.f32 %v4055_v11 }
 0x2ae   :  { %v1784_v7 = vadd.f32 %v1783_v48, %v1615_v53  ;;  %v1952_v49 = vpop.f32.mrf.mxu3  ;;  %v1447_v2 = vpop.f32.mrf.mxu0  ;;  %v4061_v53 = vld [vmem:[#allocation21_spill] sm:$0xff] }
 0x2af   :  { %v2148_v5 = vmul.f32 %v3192_v57, %v2116_v59  ;;  %v1616_v28 = vpop.f32.mrf.mxu1  ;;  %v1448_v18 = vadd.f32 %v1447_v2, %v4056_v61  ;;  %v2334_v59 = vpop.permute.xlu0 %2333 }
 0x2b0   :  { %v1953_v39 = vadd.f32 %v1952_v49, %v1784_v7  ;;  %v2339_v61 = vpop.permute.xlu1 %2338 }
 0x2b1   :  { %v2372_v14 = vmul.f32 %v2319_v32, %v2148_v5  ;;  %v1617_v41 = vadd.f32 %v1616_v28, %v1448_v18 }
 0x2b2   :  { %v3194_v43 = vpop.eup %3193  ;;  %v2022_v12 = vmul.f32 0.5, %v1953_v39  ;;  %v4062_v39 = vld [vmem:[#allocation23_spill] sm:$0xff] }
 0x2b3   :  { %v2403_v21 = vadd.f32 %v2402_v29, %v2372_v14  ;;  %v2085_v52 = vmul.f32 0.5, %v3194_v43  ;;  %v3196_v62 = vpop.eup %3195 }
 0x2b4   :  { %3197 = vtanh.f32 %v2022_v12 }
 0x2b5   :  { %v2117_v42 = vadd.f32 0.5, %v2085_v52  ;;  %v1785_v40 = vpop.f32.mrf.mxu2  ;;  %3199 = vtanh.f32 %v4057_v33 }
 0x2b6   :  { %v1786_v24 = vadd.f32 %v1785_v40, %v1617_v41  ;;  %v1954_v13 = vpop.f32.mrf.mxu3  ;;  %v1450_v4 = vpop.f32.mrf.mxu0 }
 0x2b7   :  { %v2149_v9 = vmul.f32 %v3196_v62, %v2117_v42  ;;  %v1451_v3 = vadd.f32 %v1450_v4, %v4058_v54  ;;  %v1619_v51 = vpop.f32.mrf.mxu1  ;;  %v2344_v42 = vpop.permute.xlu2 %2343 }
 0x2b8   :  { %v1955_v19 = vadd.f32 %v1954_v13, %v1786_v24 }
 0x2b9   :  { %v2373_v20 = vmul.f32 %v2324_v10, %v2149_v9  ;;  %v1620_v56 = vadd.f32 %v1619_v51, %v1451_v3  ;;  %v2416_v10 = vstv %s4015_s4 }
 0x2ba   :  { %v3198_v44 = vpop.eup %3197  ;;  %v2023_v34 = vmul.f32 0.5, %v1955_v19 }
 0x2bb   :  { %v2404_v16 = vadd.f32 %v2403_v21, %v2373_v20  ;;  %v2086_v50 = vmul.f32 0.5, %v3198_v44  ;;  %v3200_v47 = vpop.eup %3199 }
 0x2bc   :  { %3201 = vtanh.f32 %v2023_v34 }
 0x2bd   :  { %v2118_v55 = vadd.f32 0.5, %v2086_v50  ;;  %v1788_v36 = vpop.f32.mrf.mxu2  ;;  %3203 = vtanh.f32 %v4059_v23 }
 0x2be   :  { %v1789_v38 = vadd.f32 %v1788_v36, %v1620_v56  ;;  %v1957_v37 = vpop.f32.mrf.mxu3  ;;  %v1452_v27 = vpop.f32.mrf.mxu0 }
 0x2bf   :  { %v2150_v30 = vmul.f32 %v3200_v47, %v2118_v55  ;;  %v1453_v6 = vadd.f32 %v1452_v27, %v4060_v46  ;;  %v1621_v25 = vpop.f32.mrf.mxu1 }
 0x2c0   :  { %v1958_v45 = vadd.f32 %v1957_v37, %v1789_v38 }
 0x2c1   :  { %v2374_v58 = vmul.f32 %v2329_v1, %v2150_v30  ;;  %v1622_v0 = vadd.f32 %v1621_v25, %v1453_v6 }
 0x2c2   :  { %v3202_v15 = vpop.eup %3201  ;;  %v2024_v8 = vmul.f32 0.5, %v1958_v45 }
 0x2c3   :  { %v2405_v63 = vadd.f32 %v2404_v16, %v2374_v58  ;;  %v2087_v17 = vmul.f32 0.5, %v3202_v15  ;;  %v3204_v26 = vpop.eup %3203 }
 0x2c4   :  { %3205 = vtanh.f32 %v2024_v8 }
 0x2c5   :  { %v2119_v31 = vadd.f32 0.5, %v2087_v17  ;;  %v1790_v22 = vpop.f32.mrf.mxu2  ;;  %3207 = vtanh.f32 %v4061_v53 }
 0x2c6   :  { %v1791_v35 = vadd.f32 %v1790_v22, %v1622_v0  ;;  %v1959_v60 = vpop.f32.mrf.mxu3 }
 0x2c7   :  { %v2151_v29 = vmul.f32 %v3204_v26, %v2119_v31 }
 0x2c8   :  { %v1960_v48 = vadd.f32 %v1959_v60, %v1791_v35 }
 0x2c9   :  { %v2375_v57 = vmul.f32 %v2334_v59, %v2151_v29 }
 0x2ca   :  { %v3206_v7 = vpop.eup %3205  ;;  %v2025_v49 = vmul.f32 0.5, %v1960_v48 }
 0x2cb   :  { %v2406_v2 = vadd.f32 %v2405_v63, %v2375_v57  ;;  %v2088_v5 = vmul.f32 0.5, %v3206_v7  ;;  %v3208_v11 = vpop.eup %3207 }
 0x2cc   :  { %3209 = vtanh.f32 %v2025_v49 }
 0x2cd   :  { %v2120_v28 = vadd.f32 0.5, %v2088_v5  ;;  %3211 = vtanh.f32 %v4062_v39 }
 0x2cf   :  { %v2152_v32 = vmul.f32 %v3208_v11, %v2120_v28 }
 0x2d1   :  { %v2376_v18 = vmul.f32 %v2339_v61, %v2152_v32 }
 0x2d2   :  { %v3210_v14 = vpop.eup %3209 }
 0x2d3   :  { %v2407_v43 = vadd.f32 %v2406_v2, %v2376_v18  ;;  %v2089_v12 = vmul.f32 0.5, %v3210_v14  ;;  %v3212_v52 = vpop.eup %3211 }
 0x2d5   :  { %v2121_v21 = vadd.f32 0.5, %v2089_v12 }
 0x2d7   :  { %v2153_v41 = vmul.f32 %v3212_v52, %v2121_v21 }
 0x2d9   :  { %v2377_v40 = vmul.f32 %v2344_v42, %v2153_v41 }
 0x2db   :  { %v2408_v62 = vadd.f32 %v2407_v43, %v2377_v40 }
 0x2dd   :  { %v2409_v24 = vrot.slane %v2408_v62, 4 }
 0x2df   :  { %v2410_v13 = vadd.f32 %v2409_v24, %v2408_v62 }
 0x2e1   :  { %v2411_v4 = vrot.slane %v2410_v13, 2 }
 0x2e3   :  { %v2412_v9 = vadd.f32 %v2411_v4, %v2410_v13 }
 0x2e5   :  { %v2413_v33 = vrot.slane %v2412_v9, 1 }
 0x2e7   :  { %v2414_v19 = vadd.f32 %v2413_v33, %v2412_v9 }
 0x2e9   :  { %v2417_v54 = vadd.f32 %v2416_v10, %v2414_v19 }
 0x2eb   :  { %v2418_v3 = vmax.f32 %v2417_v54, 0.0 }
 0x2ed   :  { %2419 = vst [vmem:[#allocation6] sm:$0x1] %v2418_v3 }
 0x2ee   :  { %2430 = dma.vmem_to_hbm [thread:$0]  %s2426_s26, 16, %s2428_s0, [#allocation5]  }
 0x2ef   :  { %3263 = dma.done.wait [#allocation5], 16  }
 0x2f0   :  { %3264 = vsyncadd [#allocation5], 4294967280 }
 0x2f1   :  { %2435 = vsyncpa [#allocation4], 1 }
 0x2f2   :  { %2436 = vsyncpa [#allocation5], 1 }

</bundles_post_ra>
